<compile_context>
chip_gen: v5e
topology: v5e:2x2
jax: 0.10.0
libtpu: 0.0.40
codegen_flags: <defaults>
</compile_context>

<pallas_src>
import functools

import jax
import jax.numpy as jnp
from jax.experimental import pallas as pl
from jax.experimental.pallas import tpu as pltpu


def _round_up(n: int, m: int) -> int:
    return (n + m - 1) // m * m


def _sublane_pack(itemsize: int) -> int:
    # Native packed-sublane factor for the second-to-last dim.
    return {4: 8, 2: 16, 1: 32}.get(itemsize, 8)


def _tpu_vmem_capacity_bytes() -> int:
    try:
        return int(pltpu.get_tpu_info().vmem_capacity_bytes)
    except Exception:
        return 64 * 1024 * 1024  # conservative default (v7x per-core VMEM)


_VMEM_CAP = _tpu_vmem_capacity_bytes()
# Budget for kernel-managed buffers (leave plenty of headroom for compiler
# internal scratch on every generation).
_VMEM_BUDGET_BYTES = min(_VMEM_CAP // 3, 24 * 1024 * 1024)
# Scoped-VMEM limit passed explicitly to Mosaic on both paths.
_VMEM_LIMIT_BYTES = min(_VMEM_CAP // 2, 32 * 1024 * 1024)
# Whole-array single block only while the op is launch-overhead dominated;
# above this a small grid overlaps writeback with fetch (and enables dual-TC
# sharding on v7x).
_SINGLE_BLOCK_MAX_BYTES = 1 * 1024 * 1024


def _mul_whole_kernel(scale_ref, x_ref, o_ref):
    # scale_ref: (C, 1), x_ref/o_ref: (C, HW). (C,1)*(C,HW) broadcast on VPU.
    o_ref[...] = (x_ref[...] * scale_ref[...]).astype(o_ref.dtype)


def _mul_tiled_kernel(scale_ref, x_ref, o_ref, *, tc: int):
    # scale_ref: (C, 1) resident across the whole grid; x_ref/o_ref: (tc, thw).
    c0 = pl.multiple_of(pl.program_id(0) * tc, tc)
    o_ref[...] = (x_ref[...] * scale_ref[pl.ds(c0, tc), :]).astype(o_ref.dtype)


def _select_tiles(C: int, HW: int, itemsize: int, pack: int):
    """Pick (channel_tile, hw_tile) whose pipelined footprint fits VMEM budget."""
    hw_pad = _round_up(HW, 128)
    scale_bytes = _round_up(C, pack) * 128 * itemsize  # padded resident (C,1)

    def fits(tc: int, thw_pad: int) -> bool:
        # x + out blocks, double-buffered by the pipeline, + resident scale.
        return 4 * tc * thw_pad * itemsize + scale_bytes <= _VMEM_BUDGET_BYTES

    # Channel-tile candidates: divisors of C that are multiples of the packed
    # sublane factor (dtype-aware legality), plus C itself (full dim is legal).
    cands = sorted({d for d in range(pack, C + 1, pack) if C % d == 0} | {C},
                   reverse=True)

    # 1) Prefer full spatial rows (contiguous HBM segments per channel).
    for tc in cands:
        if fits(tc, hw_pad):
            return tc, HW

    # 2) Otherwise keep the smallest legal channel tile and shrink the lane
    #    (spatial) tile in multiples of 128.  If even (pack, 128) is over
    #    budget (unrealistically large C), rely on the explicit vmem limit.
    tc = cands[-1]
    thw = hw_pad
    while thw > 128 and not fits(tc, thw):
        thw = _round_up(max(128, thw // 2), 128)
    return tc, (HW if thw >= HW else thw)


def channel_scale_mul(x486: jax.Array, x481: jax.Array, *,
                      donate_x: bool = False) -> jax.Array:
    """x486: [1, C, 1, 1], x481: [1, C, H, W] -> x486 * x481."""
    assert x481.ndim == 4 and x486.ndim == 4
    assert x481.shape[0] == 1 and x486.shape[0] == 1
    assert x486.shape[1] == x481.shape[1] and x486.shape[2:] == (1, 1)
    _, C, H, W = x481.shape
    HW = H * W

    # PyTorch-style type promotion for mixed-dtype scale/activation.
    out_dtype = jnp.result_type(x486.dtype, x481.dtype)

    # Contiguous (free) reshapes: channels on sublanes, flat spatial on lanes.
    x2d = x481.reshape(C, HW)
    s2d = x486.reshape(C, 1)

    itemsize = max(jnp.dtype(x481.dtype).itemsize, jnp.dtype(out_dtype).itemsize)
    pack = _sublane_pack(itemsize)
    whole_bytes = _round_up(C, pack) * _round_up(HW, 128) * itemsize

    # Lane-dense flat view (review item, evaluated): reshaping the contiguous
    # data to (C//128, 128*HW) would make both DMAs fully dense and remove the
    # masked vst penalty (~0.5-0.7 us saved at 1536x7x7), but the per-channel
    # scale must then be expanded across lanes in-kernel (iota//HW + gather or
    # a one-hot matmul: ~780 vregs of VPU/XLU work, ~1-1.5 us) or read
    # pre-expanded from HBM (+50% traffic).  Net loss at this size, so the
    # natural (C, HW) layout is kept; when HW % 128 == 0 this layout is already
    # lane-dense and nothing needs to change.

    cost = pl.CostEstimate(
        flops=C * HW,
        transcendentals=0,
        bytes_accessed=C * HW * (jnp.dtype(x481.dtype).itemsize
                                 + jnp.dtype(out_dtype).itemsize)
        + C * jnp.dtype(x486.dtype).itemsize,
    )
    # Buffer donation only when the activation is dead after this op and the
    # dtypes match (otherwise XLA has to insert a copy anyway).
    aliases = {1: 0} if (donate_x and x481.dtype == out_dtype) else {}
    out_shape = jax.ShapeDtypeStruct((C, HW), out_dtype)

    if whole_bytes <= _SINGLE_BLOCK_MAX_BYTES:
        # Fast path (the module's shape lands here): one whole-array block,
        # no grid -> no per-step overhead, scale DMA'd exactly once.
        out2d = pl.pallas_call(
            _mul_whole_kernel,
            out_shape=out_shape,
            in_specs=[
                pl.BlockSpec(memory_space=pltpu.MemorySpace.VMEM),
                pl.BlockSpec(memory_space=pltpu.MemorySpace.VMEM),
            ],
            out_specs=pl.BlockSpec(memory_space=pltpu.MemorySpace.VMEM),
            compiler_params=pltpu.CompilerParams(
                vmem_limit_bytes=_VMEM_LIMIT_BYTES),
            cost_estimate=cost,
            input_output_aliases=aliases,
        )(s2d, x2d)
    else:
        # Gridded path: channel (and, if needed, spatial) tiling.  Writeback of
        # block i overlaps the fetch of block i+1; both grid axes are
        # "parallel" so v7x shards them across its two TensorCores.
        TC, THW = _select_tiles(C, HW, itemsize, pack)
        grid = (C // TC, pl.cdiv(HW, THW))
        out2d = pl.pallas_call(
            functools.partial(_mul_tiled_kernel, tc=TC),
            out_shape=out_shape,
            grid=grid,
            in_specs=[
                # Scale stays VMEM-resident for the whole grid (constant block
                # index -> fetched once, never re-DMA'd per step).
                pl.BlockSpec((C, 1), lambda i, j: (0, 0)),
                pl.BlockSpec((TC, THW), lambda i, j: (i, j)),
            ],
            out_specs=pl.BlockSpec((TC, THW), lambda i, j: (i, j)),
            compiler_params=pltpu.CompilerParams(
                dimension_semantics=("parallel", "parallel"),
                vmem_limit_bytes=_VMEM_LIMIT_BYTES),
            cost_estimate=cost,
            input_output_aliases=aliases,
        )(s2d, x2d)

    return out2d.reshape(1, C, H, W)


if __name__ == "__main__":
    key = jax.random.PRNGKey(0)
    k1, k2, k3, k4 = jax.random.split(key, 4)

    # Case 1: the module's shape [1,1536,7,7] x [1,1536,1,1] -> whole-array path.
    C, H, W = 1536, 7, 7
    x481 = jax.random.normal(k1, (1, C, H, W), dtype=jnp.float32)
    x486 = jax.random.normal(k2, (1, C, 1, 1), dtype=jnp.float32)
    out = channel_scale_mul(x486, x481)
    jax.block_until_ready(out)
    ref = x486 * x481
    assert out.shape == ref.shape and out.dtype == ref.dtype
    assert jnp.allclose(out, ref, atol=1e-6, rtol=1e-6)

    # Case 2: larger spatial extent -> exercises the gridded (tiled) path.
    C2, H2, W2 = 1536, 32, 32
    y481 = jax.random.normal(k3, (1, C2, H2, W2), dtype=jnp.float32)
    y486 = jax.random.normal(k4, (1, C2, 1, 1), dtype=jnp.float32)
    out2 = channel_scale_mul(y486, y481)
    jax.block_until_ready(out2)
    ref2 = y486 * y481
    assert out2.shape == ref2.shape and out2.dtype == ref2.dtype
    assert jnp.allclose(out2, ref2, atol=1e-6, rtol=1e-6)

    print("KERNEL_OK")
</pallas_src>

<mosaic_0001>
module attributes {stable_mosaic.version = 11 : i64} {
  func.func @_mul_whole_kernel(%arg0: memref<1536x1xf32, #tpu.memory_space<vmem>>, %arg1: memref<1536x49xf32, #tpu.memory_space<vmem>>, %arg2: memref<1536x49xf32, #tpu.memory_space<vmem>>) attributes {dimension_semantics = [], scalar_prefetch = 0 : i64, scratch_operands = 0 : i64, tpu.core_type = #tpu.core_type<tc>} {
    %c0 = arith.constant 0 : index
    %c0_0 = arith.constant 0 : index
    %0 = vector.load %arg1[%c0, %c0_0] : memref<1536x49xf32, #tpu.memory_space<vmem>>, vector<1536x49xf32>
    %c0_1 = arith.constant 0 : index
    %c0_2 = arith.constant 0 : index
    %1 = vector.load %arg0[%c0_1, %c0_2] : memref<1536x1xf32, #tpu.memory_space<vmem>>, vector<1536x1xf32>
    %2 = vector.broadcast %1 : vector<1536x1xf32> to vector<1536x49xf32>
    %3 = arith.mulf %0, %2 : vector<1536x49xf32>
    %c0_3 = arith.constant 0 : index
    %c0_4 = arith.constant 0 : index
    %4 = vector.load %arg2[%c0_3, %c0_4] : memref<1536x49xf32, #tpu.memory_space<vmem>>, vector<1536x49xf32>
    tpu.vector_store %arg2[%c0_3, %c0_4], %3 {strides = array<i32>} : memref<1536x49xf32, #tpu.memory_space<vmem>>, vector<1536x49xf32>,
    return
  }
}

</mosaic_0001>

<bundles_post_ra>
// kernel: tpu_custom_call.1
= control target key start
LH: loop header
LB: loop body
LE: loop exit
PB: predicated region body
PF: predicated region fallthrough
CT: control target
= control target key end

     0   :  { %v1748_v0 = vmov 0   ;;  %vm1547_vm0 = vcmask 400384   ;;  %s3684_s0 = inlined_call_operand.vmem [shape: f32[1536,1], index: 0, kind: input, shape index: {}]   ;;  %s3685_s1 = inlined_call_operand.vmem [shape: f32[1536,49], index: 1, kind: input, shape index: {}]   ;;  %s3686_s2 = inlined_call_operand.vmem [shape: f32[1536,49], index: 2, kind: output, shape index: {}]  }
   0x1   :  { %1747 = vset.pattern.permute.xlu2 %v1748_v0  ;;  %1746 = vset.pattern.permute.xlu1 %v1748_v0  ;;  %v207_v1 = vld [vmem:[%s3684_s0 + $0x20] sm:$0xff]  ;;  %v205_v2 = vld [vmem:[%s3684_s0 + $0x10] sm:$0xff]  ;;  %v208_v4 = vld [vmem:[%s3684_s0 + $0x28] sm:$0xff] }
   0x2   :  { %v203_v3 = vld [vmem:[%s3684_s0] sm:$0xff]  ;;  %1745 = vset.pattern.permute.xlu0 %v1748_v0  ;;  %417 = vperm.xlu2 %1747, %v207_v1   ;;  %v206_v5 = vld [vmem:[%s3684_s0 + $0x18] sm:$0xff]  ;;  %v204_v6 = vld [vmem:[%s3684_s0 + $0x8] sm:$0xff] }
   0x3   :  { %407 = vperm.xlu1 %1746, %v205_v2   ;;  %397 = vperm.xlu0 %1745, %v203_v3   ;;  %v211_v7 = vld [vmem:[%s3684_s0 + $0x40] sm:$0xff]  ;;  %v210_v8 = vld [vmem:[%s3684_s0 + $0x38] sm:$0xff]  ;;  %v209_v9 = vld [vmem:[%s3684_s0 + $0x30] sm:$0xff] }
   0x4   :  { %v214_v10 = vld [vmem:[%s3684_s0 + $0x58] sm:$0xff]  ;;  %v213_v11 = vld [vmem:[%s3684_s0 + $0x50] sm:$0xff]  ;;  %v212_v12 = vld [vmem:[%s3684_s0 + $0x48] sm:$0xff] }
   0x5   :  { %v217_v13 = vld [vmem:[%s3684_s0 + $0x70] sm:$0xff]  ;;  %v216_v14 = vld [vmem:[%s3684_s0 + $0x68] sm:$0xff]  ;;  %v215_v15 = vld [vmem:[%s3684_s0 + $0x60] sm:$0xff] }
   0x6   :  { %v220_v16 = vld [vmem:[%s3684_s0 + $0x88] sm:$0xff]  ;;  %v219_v17 = vld [vmem:[%s3684_s0 + $0x80] sm:$0xff]  ;;  %v218_v18 = vld [vmem:[%s3684_s0 + $0x78] sm:$0xff] }
   0x7   :  { %v223_v19 = vld [vmem:[%s3684_s0 + $0xa0] sm:$0xff]  ;;  %v222_v20 = vld [vmem:[%s3684_s0 + $0x98] sm:$0xff]  ;;  %v221_v21 = vld [vmem:[%s3684_s0 + $0x90] sm:$0xff] }
   0x8   :  { %v226_v22 = vld [vmem:[%s3684_s0 + $0xb8] sm:$0xff]  ;;  %v225_v23 = vld [vmem:[%s3684_s0 + $0xb0] sm:$0xff]  ;;  %v224_v24 = vld [vmem:[%s3684_s0 + $0xa8] sm:$0xff] }
   0x9   :  { %v229_v25 = vld [vmem:[%s3684_s0 + $0xd0] sm:$0xff]  ;;  %v228_v26 = vld [vmem:[%s3684_s0 + $0xc8] sm:$0xff]  ;;  %v227_v27 = vld [vmem:[%s3684_s0 + $0xc0] sm:$0xff] }
   0xa   :  { %422 = vperm.xlu2 %1747, %v208_v4   ;;  %v232_v28 = vld [vmem:[%s3684_s0 + $0xe8] sm:$0xff]  ;;  %v231_v29 = vld [vmem:[%s3684_s0 + $0xe0] sm:$0xff]  ;;  %v230_v30 = vld [vmem:[%s3684_s0 + $0xd8] sm:$0xff] }
   0xb   :  { %412 = vperm.xlu1 %1746, %v206_v5   ;;  %402 = vperm.xlu0 %1745, %v204_v6   ;;  %v235_v31 = vld [vmem:[%s3684_s0 + $0x100] sm:$0xff]  ;;  %v234_v32 = vld [vmem:[%s3684_s0 + $0xf8] sm:$0xff]  ;;  %v233_v33 = vld [vmem:[%s3684_s0 + $0xf0] sm:$0xff] }
   0xc   :  { %v238_v34 = vld [vmem:[%s3684_s0 + $0x118] sm:$0xff]  ;;  %v237_v35 = vld [vmem:[%s3684_s0 + $0x110] sm:$0xff]  ;;  %v236_v36 = vld [vmem:[%s3684_s0 + $0x108] sm:$0xff] }
   0xd   :  { %v15_v37 = vld [vmem:[%s3685_s1 + $0x20] sm:$0xff]  ;;  %v241_v40 = vld [vmem:[%s3684_s0 + $0x130] sm:$0xff]  ;;  %v240_v41 = vld [vmem:[%s3684_s0 + $0x128] sm:$0xff] }
   0xe   :  { %v239_v42 = vld [vmem:[%s3684_s0 + $0x120] sm:$0xff]  ;;  %v16_v43 = vld [vmem:[%s3685_s1 + $0x28] sm:$0xff]  ;;  %v242_v48 = vld [vmem:[%s3684_s0 + $0x138] sm:$0xff] }
   0xf   :  { %v244_v46 = vld [vmem:[%s3684_s0 + $0x148] sm:$0xff]  ;;  %v243_v47 = vld [vmem:[%s3684_s0 + $0x140] sm:$0xff]  ;;  %v246_v53 = vld [vmem:[%s3684_s0 + $0x158] sm:$0xff] }
  0x10   :  { %v19_v49 = vld [vmem:[%s3685_s1 + $0x40] sm:$0xff]  ;;  %v245_v54 = vld [vmem:[%s3684_s0 + $0x150] sm:$0xff]  ;;  %v22_v55 = vld [vmem:[%s3685_s1 + $0x58] sm:$0xff] }
  0x11   :  { %v247_v52 = vld [vmem:[%s3684_s0 + $0x160] sm:$0xff]  ;;  %v13_v56 = vld [vmem:[%s3685_s1 + $0x10] sm:$0xff]  ;;  %v250_v0 = vld [vmem:[%s3684_s0 + $0x178] sm:$0xff] }
  0x12   :  { %437 = vperm.xlu2 %1747, %v211_v7   ;;  %v11_v57 = vld [vmem:[%s3685_s1] sm:$0xff]  ;;  %v249_v1 = vld [vmem:[%s3684_s0 + $0x170] sm:$0xff]  ;;  %v248_v2 = vld [vmem:[%s3684_s0 + $0x168] sm:$0xff] }
  0x13   :  { %432 = vperm.xlu1 %1746, %v210_v8   ;;  %427 = vperm.xlu0 %1745, %v209_v9   ;;  %v25_v3 = vld [vmem:[%s3685_s1 + $0x70] sm:$0xff]  ;;  %v14_v4 = vld [vmem:[%s3685_s1 + $0x18] sm:$0xff]  ;;  %v12_v5 = vld [vmem:[%s3685_s1 + $0x8] sm:$0xff] }
  0x1a   :  { %452 = vperm.xlu2 %1747, %v214_v10  }
  0x1b   :  { %447 = vperm.xlu1 %1746, %v213_v11   ;;  %442 = vperm.xlu0 %1745, %v212_v12   ;;  %v253_v12 = vld [vmem:[%s3684_s0 + $0x190] sm:$0xff] }
  0x22   :  { %467 = vperm.xlu2 %1747, %v217_v13   ;;  %v252_v13 = vld [vmem:[%s3684_s0 + $0x188] sm:$0xff] }
  0x23   :  { %462 = vperm.xlu1 %1746, %v216_v14   ;;  %457 = vperm.xlu0 %1745, %v215_v15   ;;  %v251_v14 = vld [vmem:[%s3684_s0 + $0x180] sm:$0xff]  ;;  %v28_v15 = vld [vmem:[%s3685_s1 + $0x88] sm:$0xff] }
  0x2a   :  { %482 = vperm.xlu2 %1747, %v220_v16   ;;  %v18_v16 = vld [vmem:[%s3685_s1 + $0x38] sm:$0xff] }
  0x2b   :  { %477 = vperm.xlu1 %1746, %v219_v17   ;;  %472 = vperm.xlu0 %1745, %v218_v18   ;;  %v17_v17 = vld [vmem:[%s3685_s1 + $0x30] sm:$0xff] }
  0x32   :  { %497 = vperm.xlu2 %1747, %v223_v19  }
  0x33   :  { %492 = vperm.xlu1 %1746, %v222_v20   ;;  %487 = vperm.xlu0 %1745, %v221_v21  }
  0x3a   :  { %512 = vperm.xlu2 %1747, %v226_v22  }
  0x3b   :  { %507 = vperm.xlu1 %1746, %v225_v23   ;;  %502 = vperm.xlu0 %1745, %v224_v24   ;;  %v256_v24 = vld [vmem:[%s3684_s0 + $0x1a8] sm:$0xff] }
  0x42   :  { %527 = vperm.xlu2 %1747, %v229_v25   ;;  %v255_v25 = vld [vmem:[%s3684_s0 + $0x1a0] sm:$0xff] }
  0x43   :  { %522 = vperm.xlu1 %1746, %v228_v26   ;;  %517 = vperm.xlu0 %1745, %v227_v27   ;;  %v254_v26 = vld [vmem:[%s3684_s0 + $0x198] sm:$0xff]  ;;  %v31_v27 = vld [vmem:[%s3685_s1 + $0xa0] sm:$0xff] }
  0x4a   :  { %542 = vperm.xlu2 %1747, %v232_v28   ;;  %v21_v28 = vld [vmem:[%s3685_s1 + $0x50] sm:$0xff] }
  0x4b   :  { %537 = vperm.xlu1 %1746, %v231_v29   ;;  %532 = vperm.xlu0 %1745, %v230_v30   ;;  %v20_v29 = vld [vmem:[%s3685_s1 + $0x48] sm:$0xff] }
  0x52   :  { %557 = vperm.xlu2 %1747, %v235_v31  }
  0x53   :  { %552 = vperm.xlu1 %1746, %v234_v32   ;;  %547 = vperm.xlu0 %1745, %v233_v33  }
  0x5a   :  { %572 = vperm.xlu2 %1747, %v238_v34  }
  0x5b   :  { %567 = vperm.xlu1 %1746, %v237_v35   ;;  %562 = vperm.xlu0 %1745, %v236_v36   ;;  %v259_v36 = vld [vmem:[%s3684_s0 + $0x1c0] sm:$0xff] }
  0x5c   :  { %v418_v38 = vpop.permute.xlu2 %417 }
  0x5d   :  { %v1359_v39 = vmul.f32 %v418_v38, %v15_v37  ;;  %v258_v37 = vld [vmem:[%s3684_s0 + $0x1b8] sm:$0xff]  ;;  %v257_v38 = vld [vmem:[%s3684_s0 + $0x1b0] sm:$0xff] }
  0x5f   :  { %1552 = vst.msk [vmem:[%s3686_s2 + $0x20] sm:$0xff] %vm1547_vm0, %v1359_v39  ;;  %v34_v39 = vld [vmem:[%s3685_s1 + $0xb8] sm:$0xff] }
  0x62   :  { %587 = vperm.xlu2 %1747, %v241_v40   ;;  %v24_v40 = vld [vmem:[%s3685_s1 + $0x68] sm:$0xff] }
  0x63   :  { %582 = vperm.xlu1 %1746, %v240_v41   ;;  %577 = vperm.xlu0 %1745, %v239_v42   ;;  %v23_v41 = vld [vmem:[%s3685_s1 + $0x60] sm:$0xff] }
  0x64   :  { %v423_v44 = vpop.permute.xlu2 %422 }
  0x65   :  { %v1360_v45 = vmul.f32 %v423_v44, %v16_v43 }
  0x67   :  { %1553 = vst.msk [vmem:[%s3686_s2 + $0x28] sm:$0xff] %vm1547_vm0, %v1360_v45 }
  0x6a   :  { %602 = vperm.xlu2 %1747, %v244_v46  }
  0x6b   :  { %597 = vperm.xlu1 %1746, %v243_v47   ;;  %592 = vperm.xlu0 %1745, %v242_v48   ;;  %v262_v48 = vld [vmem:[%s3684_s0 + $0x1d8] sm:$0xff] }
  0x6c   :  { %v438_v50 = vpop.permute.xlu2 %437 }
  0x6d   :  { %v1363_v51 = vmul.f32 %v438_v50, %v19_v49  ;;  %v261_v49 = vld [vmem:[%s3684_s0 + $0x1d0] sm:$0xff]  ;;  %v260_v50 = vld [vmem:[%s3684_s0 + $0x1c8] sm:$0xff] }
  0x6f   :  { %1556 = vst.msk [vmem:[%s3686_s2 + $0x40] sm:$0xff] %vm1547_vm0, %v1363_v51  ;;  %v37_v51 = vld [vmem:[%s3685_s1 + $0xd0] sm:$0xff] }
  0x72   :  { %617 = vperm.xlu2 %1747, %v247_v52   ;;  %v27_v52 = vld [vmem:[%s3685_s1 + $0x80] sm:$0xff] }
  0x73   :  { %612 = vperm.xlu1 %1746, %v246_v53   ;;  %607 = vperm.xlu0 %1745, %v245_v54   ;;  %v26_v53 = vld [vmem:[%s3685_s1 + $0x78] sm:$0xff] }
  0x74   :  { %v453_v58 = vpop.permute.xlu2 %452 }
  0x75   :  { %v1366_v59 = vmul.f32 %v453_v58, %v22_v55  ;;  %v408_v60 = vpop.permute.xlu1 %407  ;;  %v398_v61 = vpop.permute.xlu0 %397 }
  0x76   :  { %v1357_v62 = vmul.f32 %v408_v60, %v13_v56  ;;  %v1355_v63 = vmul.f32 %v398_v61, %v11_v57  ;;  %v265_v60 = vld [vmem:[%s3684_s0 + $0x1f0] sm:$0xff]  ;;  %v264_v61 = vld [vmem:[%s3684_s0 + $0x1e8] sm:$0xff] }
  0x77   :  { %1559 = vst.msk [vmem:[%s3686_s2 + $0x58] sm:$0xff] %vm1547_vm0, %v1366_v59 }
  0x78   :  { %1550 = vst.msk [vmem:[%s3686_s2 + $0x10] sm:$0xff] %vm1547_vm0, %v1357_v62  ;;  %v263_v62 = vld [vmem:[%s3684_s0 + $0x1e0] sm:$0xff] }
  0x79   :  { %1548 = vst.msk [vmem:[%s3686_s2] sm:$0xff] %vm1547_vm0, %v1355_v63  ;;  %v40_v63 = vld [vmem:[%s3685_s1 + $0xe8] sm:$0xff] }
  0x7a   :  { %632 = vperm.xlu2 %1747, %v250_v0   ;;  %v30_v0 = vld [vmem:[%s3685_s1 + $0x98] sm:$0xff] }
  0x7b   :  { %627 = vperm.xlu1 %1746, %v249_v1   ;;  %622 = vperm.xlu0 %1745, %v248_v2   ;;  %v29_v1 = vld [vmem:[%s3685_s1 + $0x90] sm:$0xff] }
  0x7c   :  { %v468_v6 = vpop.permute.xlu2 %467 }
  0x7d   :  { %v1369_v7 = vmul.f32 %v468_v6, %v25_v3  ;;  %v413_v8 = vpop.permute.xlu1 %412  ;;  %v403_v9 = vpop.permute.xlu0 %402 }
  0x7e   :  { %v1358_v10 = vmul.f32 %v413_v8, %v14_v4  ;;  %v1356_v11 = vmul.f32 %v403_v9, %v12_v5  ;;  %v268_v8 = vld [vmem:[%s3684_s0 + $0x208] sm:$0xff]  ;;  %v267_v9 = vld [vmem:[%s3684_s0 + $0x200] sm:$0xff] }
  0x7f   :  { %1562 = vst.msk [vmem:[%s3686_s2 + $0x70] sm:$0xff] %vm1547_vm0, %v1369_v7 }
  0x80   :  { %1551 = vst.msk [vmem:[%s3686_s2 + $0x18] sm:$0xff] %vm1547_vm0, %v1358_v10  ;;  %v266_v10 = vld [vmem:[%s3684_s0 + $0x1f8] sm:$0xff] }
  0x81   :  { %1549 = vst.msk [vmem:[%s3686_s2 + $0x8] sm:$0xff] %vm1547_vm0, %v1356_v11  ;;  %v43_v11 = vld [vmem:[%s3685_s1 + $0x100] sm:$0xff] }
  0x82   :  { %647 = vperm.xlu2 %1747, %v253_v12   ;;  %v33_v12 = vld [vmem:[%s3685_s1 + $0xb0] sm:$0xff] }
  0x83   :  { %642 = vperm.xlu1 %1746, %v252_v13   ;;  %637 = vperm.xlu0 %1745, %v251_v14   ;;  %v32_v13 = vld [vmem:[%s3685_s1 + $0xa8] sm:$0xff] }
  0x84   :  { %v483_v18 = vpop.permute.xlu2 %482 }
  0x85   :  { %v1372_v19 = vmul.f32 %v483_v18, %v28_v15  ;;  %v433_v20 = vpop.permute.xlu1 %432  ;;  %v428_v21 = vpop.permute.xlu0 %427 }
  0x86   :  { %v1362_v22 = vmul.f32 %v433_v20, %v18_v16  ;;  %v1361_v23 = vmul.f32 %v428_v21, %v17_v17  ;;  %v271_v20 = vld [vmem:[%s3684_s0 + $0x220] sm:$0xff]  ;;  %v270_v21 = vld [vmem:[%s3684_s0 + $0x218] sm:$0xff] }
  0x87   :  { %1565 = vst.msk [vmem:[%s3686_s2 + $0x88] sm:$0xff] %vm1547_vm0, %v1372_v19 }
  0x88   :  { %1555 = vst.msk [vmem:[%s3686_s2 + $0x38] sm:$0xff] %vm1547_vm0, %v1362_v22  ;;  %v269_v22 = vld [vmem:[%s3684_s0 + $0x210] sm:$0xff] }
  0x89   :  { %1554 = vst.msk [vmem:[%s3686_s2 + $0x30] sm:$0xff] %vm1547_vm0, %v1361_v23  ;;  %v46_v23 = vld [vmem:[%s3685_s1 + $0x118] sm:$0xff] }
  0x8a   :  { %662 = vperm.xlu2 %1747, %v256_v24   ;;  %v36_v24 = vld [vmem:[%s3685_s1 + $0xc8] sm:$0xff] }
  0x8b   :  { %657 = vperm.xlu1 %1746, %v255_v25   ;;  %652 = vperm.xlu0 %1745, %v254_v26   ;;  %v35_v25 = vld [vmem:[%s3685_s1 + $0xc0] sm:$0xff] }
  0x8c   :  { %v498_v30 = vpop.permute.xlu2 %497 }
  0x8d   :  { %v1375_v31 = vmul.f32 %v498_v30, %v31_v27  ;;  %v448_v32 = vpop.permute.xlu1 %447  ;;  %v443_v33 = vpop.permute.xlu0 %442 }
  0x8e   :  { %v1365_v34 = vmul.f32 %v448_v32, %v21_v28  ;;  %v1364_v35 = vmul.f32 %v443_v33, %v20_v29  ;;  %v274_v32 = vld [vmem:[%s3684_s0 + $0x238] sm:$0xff]  ;;  %v273_v33 = vld [vmem:[%s3684_s0 + $0x230] sm:$0xff] }
  0x8f   :  { %1568 = vst.msk [vmem:[%s3686_s2 + $0xa0] sm:$0xff] %vm1547_vm0, %v1375_v31 }
  0x90   :  { %1558 = vst.msk [vmem:[%s3686_s2 + $0x50] sm:$0xff] %vm1547_vm0, %v1365_v34  ;;  %v272_v34 = vld [vmem:[%s3684_s0 + $0x228] sm:$0xff] }
  0x91   :  { %1557 = vst.msk [vmem:[%s3686_s2 + $0x48] sm:$0xff] %vm1547_vm0, %v1364_v35  ;;  %v49_v35 = vld [vmem:[%s3685_s1 + $0x130] sm:$0xff] }
  0x92   :  { %677 = vperm.xlu2 %1747, %v259_v36   ;;  %v39_v36 = vld [vmem:[%s3685_s1 + $0xe0] sm:$0xff] }
  0x93   :  { %672 = vperm.xlu1 %1746, %v258_v37   ;;  %667 = vperm.xlu0 %1745, %v257_v38   ;;  %v38_v37 = vld [vmem:[%s3685_s1 + $0xd8] sm:$0xff] }
  0x94   :  { %v513_v42 = vpop.permute.xlu2 %512 }
  0x95   :  { %v1378_v43 = vmul.f32 %v513_v42, %v34_v39  ;;  %v463_v44 = vpop.permute.xlu1 %462  ;;  %v458_v45 = vpop.permute.xlu0 %457 }
  0x96   :  { %v1368_v46 = vmul.f32 %v463_v44, %v24_v40  ;;  %v1367_v47 = vmul.f32 %v458_v45, %v23_v41  ;;  %v277_v44 = vld [vmem:[%s3684_s0 + $0x250] sm:$0xff]  ;;  %v276_v45 = vld [vmem:[%s3684_s0 + $0x248] sm:$0xff] }
  0x97   :  { %1571 = vst.msk [vmem:[%s3686_s2 + $0xb8] sm:$0xff] %vm1547_vm0, %v1378_v43 }
  0x98   :  { %1561 = vst.msk [vmem:[%s3686_s2 + $0x68] sm:$0xff] %vm1547_vm0, %v1368_v46  ;;  %v275_v46 = vld [vmem:[%s3684_s0 + $0x240] sm:$0xff] }
  0x99   :  { %1560 = vst.msk [vmem:[%s3686_s2 + $0x60] sm:$0xff] %vm1547_vm0, %v1367_v47  ;;  %v52_v47 = vld [vmem:[%s3685_s1 + $0x148] sm:$0xff] }
  0x9a   :  { %692 = vperm.xlu2 %1747, %v262_v48   ;;  %v42_v48 = vld [vmem:[%s3685_s1 + $0xf8] sm:$0xff] }
  0x9b   :  { %687 = vperm.xlu1 %1746, %v261_v49   ;;  %682 = vperm.xlu0 %1745, %v260_v50   ;;  %v41_v49 = vld [vmem:[%s3685_s1 + $0xf0] sm:$0xff] }
  0x9c   :  { %v528_v54 = vpop.permute.xlu2 %527 }
  0x9d   :  { %v1381_v55 = vmul.f32 %v528_v54, %v37_v51  ;;  %v478_v56 = vpop.permute.xlu1 %477  ;;  %v473_v57 = vpop.permute.xlu0 %472 }
  0x9e   :  { %v1371_v58 = vmul.f32 %v478_v56, %v27_v52  ;;  %v1370_v59 = vmul.f32 %v473_v57, %v26_v53  ;;  %v280_v56 = vld [vmem:[%s3684_s0 + $0x268] sm:$0xff]  ;;  %v279_v57 = vld [vmem:[%s3684_s0 + $0x260] sm:$0xff] }
  0x9f   :  { %1574 = vst.msk [vmem:[%s3686_s2 + $0xd0] sm:$0xff] %vm1547_vm0, %v1381_v55 }
  0xa0   :  { %1564 = vst.msk [vmem:[%s3686_s2 + $0x80] sm:$0xff] %vm1547_vm0, %v1371_v58  ;;  %v278_v58 = vld [vmem:[%s3684_s0 + $0x258] sm:$0xff] }
  0xa1   :  { %1563 = vst.msk [vmem:[%s3686_s2 + $0x78] sm:$0xff] %vm1547_vm0, %v1370_v59  ;;  %v55_v59 = vld [vmem:[%s3685_s1 + $0x160] sm:$0xff] }
  0xa2   :  { %707 = vperm.xlu2 %1747, %v265_v60   ;;  %v45_v60 = vld [vmem:[%s3685_s1 + $0x110] sm:$0xff] }
  0xa3   :  { %702 = vperm.xlu1 %1746, %v264_v61   ;;  %697 = vperm.xlu0 %1745, %v263_v62   ;;  %v44_v61 = vld [vmem:[%s3685_s1 + $0x108] sm:$0xff] }
  0xa4   :  { %v543_v2 = vpop.permute.xlu2 %542 }
  0xa5   :  { %v1384_v3 = vmul.f32 %v543_v2, %v40_v63  ;;  %v493_v4 = vpop.permute.xlu1 %492  ;;  %v488_v5 = vpop.permute.xlu0 %487 }
  0xa6   :  { %v1374_v6 = vmul.f32 %v493_v4, %v30_v0  ;;  %v1373_v7 = vmul.f32 %v488_v5, %v29_v1  ;;  %v283_v4 = vld [vmem:[%s3684_s0 + $0x280] sm:$0xff]  ;;  %v282_v5 = vld [vmem:[%s3684_s0 + $0x278] sm:$0xff] }
  0xa7   :  { %1577 = vst.msk [vmem:[%s3686_s2 + $0xe8] sm:$0xff] %vm1547_vm0, %v1384_v3 }
  0xa8   :  { %1567 = vst.msk [vmem:[%s3686_s2 + $0x98] sm:$0xff] %vm1547_vm0, %v1374_v6  ;;  %v281_v6 = vld [vmem:[%s3684_s0 + $0x270] sm:$0xff] }
  0xa9   :  { %1566 = vst.msk [vmem:[%s3686_s2 + $0x90] sm:$0xff] %vm1547_vm0, %v1373_v7  ;;  %v58_v7 = vld [vmem:[%s3685_s1 + $0x178] sm:$0xff] }
  0xaa   :  { %722 = vperm.xlu2 %1747, %v268_v8   ;;  %v48_v8 = vld [vmem:[%s3685_s1 + $0x128] sm:$0xff] }
  0xab   :  { %717 = vperm.xlu1 %1746, %v267_v9   ;;  %712 = vperm.xlu0 %1745, %v266_v10   ;;  %v47_v9 = vld [vmem:[%s3685_s1 + $0x120] sm:$0xff] }
  0xac   :  { %v558_v14 = vpop.permute.xlu2 %557 }
  0xad   :  { %v1387_v15 = vmul.f32 %v558_v14, %v43_v11  ;;  %v508_v16 = vpop.permute.xlu1 %507  ;;  %v503_v17 = vpop.permute.xlu0 %502 }
  0xae   :  { %v1377_v18 = vmul.f32 %v508_v16, %v33_v12  ;;  %v1376_v19 = vmul.f32 %v503_v17, %v32_v13  ;;  %v286_v16 = vld [vmem:[%s3684_s0 + $0x298] sm:$0xff]  ;;  %v285_v17 = vld [vmem:[%s3684_s0 + $0x290] sm:$0xff] }
  0xaf   :  { %1580 = vst.msk [vmem:[%s3686_s2 + $0x100] sm:$0xff] %vm1547_vm0, %v1387_v15 }
  0xb0   :  { %1570 = vst.msk [vmem:[%s3686_s2 + $0xb0] sm:$0xff] %vm1547_vm0, %v1377_v18  ;;  %v284_v18 = vld [vmem:[%s3684_s0 + $0x288] sm:$0xff] }
  0xb1   :  { %1569 = vst.msk [vmem:[%s3686_s2 + $0xa8] sm:$0xff] %vm1547_vm0, %v1376_v19  ;;  %v61_v19 = vld [vmem:[%s3685_s1 + $0x190] sm:$0xff] }
  0xb2   :  { %737 = vperm.xlu2 %1747, %v271_v20   ;;  %v51_v20 = vld [vmem:[%s3685_s1 + $0x140] sm:$0xff] }
  0xb3   :  { %732 = vperm.xlu1 %1746, %v270_v21   ;;  %727 = vperm.xlu0 %1745, %v269_v22   ;;  %v50_v21 = vld [vmem:[%s3685_s1 + $0x138] sm:$0xff] }
  0xb4   :  { %v573_v26 = vpop.permute.xlu2 %572 }
  0xb5   :  { %v1390_v27 = vmul.f32 %v573_v26, %v46_v23  ;;  %v523_v28 = vpop.permute.xlu1 %522  ;;  %v518_v29 = vpop.permute.xlu0 %517 }
  0xb6   :  { %v1380_v30 = vmul.f32 %v523_v28, %v36_v24  ;;  %v1379_v31 = vmul.f32 %v518_v29, %v35_v25  ;;  %v289_v28 = vld [vmem:[%s3684_s0 + $0x2b0] sm:$0xff]  ;;  %v288_v29 = vld [vmem:[%s3684_s0 + $0x2a8] sm:$0xff] }
  0xb7   :  { %1583 = vst.msk [vmem:[%s3686_s2 + $0x118] sm:$0xff] %vm1547_vm0, %v1390_v27 }
  0xb8   :  { %1573 = vst.msk [vmem:[%s3686_s2 + $0xc8] sm:$0xff] %vm1547_vm0, %v1380_v30  ;;  %v287_v30 = vld [vmem:[%s3684_s0 + $0x2a0] sm:$0xff] }
  0xb9   :  { %1572 = vst.msk [vmem:[%s3686_s2 + $0xc0] sm:$0xff] %vm1547_vm0, %v1379_v31  ;;  %v64_v31 = vld [vmem:[%s3685_s1 + $0x1a8] sm:$0xff] }
  0xba   :  { %752 = vperm.xlu2 %1747, %v274_v32   ;;  %v54_v32 = vld [vmem:[%s3685_s1 + $0x158] sm:$0xff] }
  0xbb   :  { %747 = vperm.xlu1 %1746, %v273_v33   ;;  %742 = vperm.xlu0 %1745, %v272_v34   ;;  %v53_v33 = vld [vmem:[%s3685_s1 + $0x150] sm:$0xff] }
  0xbc   :  { %v588_v38 = vpop.permute.xlu2 %587 }
  0xbd   :  { %v1393_v39 = vmul.f32 %v588_v38, %v49_v35  ;;  %v538_v40 = vpop.permute.xlu1 %537  ;;  %v533_v41 = vpop.permute.xlu0 %532 }
  0xbe   :  { %v1383_v42 = vmul.f32 %v538_v40, %v39_v36  ;;  %v1382_v43 = vmul.f32 %v533_v41, %v38_v37  ;;  %v292_v40 = vld [vmem:[%s3684_s0 + $0x2c8] sm:$0xff]  ;;  %v291_v41 = vld [vmem:[%s3684_s0 + $0x2c0] sm:$0xff] }
  0xbf   :  { %1586 = vst.msk [vmem:[%s3686_s2 + $0x130] sm:$0xff] %vm1547_vm0, %v1393_v39 }
  0xc0   :  { %1576 = vst.msk [vmem:[%s3686_s2 + $0xe0] sm:$0xff] %vm1547_vm0, %v1383_v42  ;;  %v290_v42 = vld [vmem:[%s3684_s0 + $0x2b8] sm:$0xff] }
  0xc1   :  { %1575 = vst.msk [vmem:[%s3686_s2 + $0xd8] sm:$0xff] %vm1547_vm0, %v1382_v43  ;;  %v67_v43 = vld [vmem:[%s3685_s1 + $0x1c0] sm:$0xff] }
  0xc2   :  { %767 = vperm.xlu2 %1747, %v277_v44   ;;  %v57_v44 = vld [vmem:[%s3685_s1 + $0x170] sm:$0xff] }
  0xc3   :  { %762 = vperm.xlu1 %1746, %v276_v45   ;;  %757 = vperm.xlu0 %1745, %v275_v46   ;;  %v56_v45 = vld [vmem:[%s3685_s1 + $0x168] sm:$0xff] }
  0xc4   :  { %v603_v50 = vpop.permute.xlu2 %602 }
  0xc5   :  { %v1396_v51 = vmul.f32 %v603_v50, %v52_v47  ;;  %v553_v52 = vpop.permute.xlu1 %552  ;;  %v548_v53 = vpop.permute.xlu0 %547 }
  0xc6   :  { %v1386_v54 = vmul.f32 %v553_v52, %v42_v48  ;;  %v1385_v55 = vmul.f32 %v548_v53, %v41_v49  ;;  %v295_v52 = vld [vmem:[%s3684_s0 + $0x2e0] sm:$0xff]  ;;  %v294_v53 = vld [vmem:[%s3684_s0 + $0x2d8] sm:$0xff] }
  0xc7   :  { %1589 = vst.msk [vmem:[%s3686_s2 + $0x148] sm:$0xff] %vm1547_vm0, %v1396_v51 }
  0xc8   :  { %1579 = vst.msk [vmem:[%s3686_s2 + $0xf8] sm:$0xff] %vm1547_vm0, %v1386_v54  ;;  %v293_v54 = vld [vmem:[%s3684_s0 + $0x2d0] sm:$0xff] }
  0xc9   :  { %1578 = vst.msk [vmem:[%s3686_s2 + $0xf0] sm:$0xff] %vm1547_vm0, %v1385_v55  ;;  %v70_v55 = vld [vmem:[%s3685_s1 + $0x1d8] sm:$0xff] }
  0xca   :  { %782 = vperm.xlu2 %1747, %v280_v56   ;;  %v60_v56 = vld [vmem:[%s3685_s1 + $0x188] sm:$0xff] }
  0xcb   :  { %777 = vperm.xlu1 %1746, %v279_v57   ;;  %772 = vperm.xlu0 %1745, %v278_v58   ;;  %v59_v57 = vld [vmem:[%s3685_s1 + $0x180] sm:$0xff] }
  0xcc   :  { %v618_v62 = vpop.permute.xlu2 %617 }
  0xcd   :  { %v1399_v63 = vmul.f32 %v618_v62, %v55_v59  ;;  %v568_v0 = vpop.permute.xlu1 %567  ;;  %v563_v1 = vpop.permute.xlu0 %562 }
  0xce   :  { %v1389_v2 = vmul.f32 %v568_v0, %v45_v60  ;;  %v1388_v3 = vmul.f32 %v563_v1, %v44_v61  ;;  %v298_v0 = vld [vmem:[%s3684_s0 + $0x2f8] sm:$0xff]  ;;  %v297_v1 = vld [vmem:[%s3684_s0 + $0x2f0] sm:$0xff] }
  0xcf   :  { %1592 = vst.msk [vmem:[%s3686_s2 + $0x160] sm:$0xff] %vm1547_vm0, %v1399_v63 }
  0xd0   :  { %1582 = vst.msk [vmem:[%s3686_s2 + $0x110] sm:$0xff] %vm1547_vm0, %v1389_v2  ;;  %v296_v2 = vld [vmem:[%s3684_s0 + $0x2e8] sm:$0xff] }
  0xd1   :  { %1581 = vst.msk [vmem:[%s3686_s2 + $0x108] sm:$0xff] %vm1547_vm0, %v1388_v3  ;;  %v73_v3 = vld [vmem:[%s3685_s1 + $0x1f0] sm:$0xff] }
  0xd2   :  { %797 = vperm.xlu2 %1747, %v283_v4   ;;  %v63_v4 = vld [vmem:[%s3685_s1 + $0x1a0] sm:$0xff] }
  0xd3   :  { %792 = vperm.xlu1 %1746, %v282_v5   ;;  %787 = vperm.xlu0 %1745, %v281_v6   ;;  %v62_v5 = vld [vmem:[%s3685_s1 + $0x198] sm:$0xff] }
  0xd4   :  { %v633_v10 = vpop.permute.xlu2 %632 }
  0xd5   :  { %v1402_v11 = vmul.f32 %v633_v10, %v58_v7  ;;  %v583_v12 = vpop.permute.xlu1 %582  ;;  %v578_v13 = vpop.permute.xlu0 %577 }
  0xd6   :  { %v1392_v14 = vmul.f32 %v583_v12, %v48_v8  ;;  %v1391_v15 = vmul.f32 %v578_v13, %v47_v9  ;;  %v301_v12 = vld [vmem:[%s3684_s0 + $0x310] sm:$0xff]  ;;  %v300_v13 = vld [vmem:[%s3684_s0 + $0x308] sm:$0xff] }
  0xd7   :  { %1595 = vst.msk [vmem:[%s3686_s2 + $0x178] sm:$0xff] %vm1547_vm0, %v1402_v11 }
  0xd8   :  { %1585 = vst.msk [vmem:[%s3686_s2 + $0x128] sm:$0xff] %vm1547_vm0, %v1392_v14  ;;  %v299_v14 = vld [vmem:[%s3684_s0 + $0x300] sm:$0xff] }
  0xd9   :  { %1584 = vst.msk [vmem:[%s3686_s2 + $0x120] sm:$0xff] %vm1547_vm0, %v1391_v15  ;;  %v76_v15 = vld [vmem:[%s3685_s1 + $0x208] sm:$0xff] }
  0xda   :  { %812 = vperm.xlu2 %1747, %v286_v16   ;;  %v66_v16 = vld [vmem:[%s3685_s1 + $0x1b8] sm:$0xff] }
  0xdb   :  { %807 = vperm.xlu1 %1746, %v285_v17   ;;  %802 = vperm.xlu0 %1745, %v284_v18   ;;  %v65_v17 = vld [vmem:[%s3685_s1 + $0x1b0] sm:$0xff] }
  0xdc   :  { %v648_v22 = vpop.permute.xlu2 %647 }
  0xdd   :  { %v1405_v23 = vmul.f32 %v648_v22, %v61_v19  ;;  %v598_v24 = vpop.permute.xlu1 %597  ;;  %v593_v25 = vpop.permute.xlu0 %592 }
  0xde   :  { %v1395_v26 = vmul.f32 %v598_v24, %v51_v20  ;;  %v1394_v27 = vmul.f32 %v593_v25, %v50_v21  ;;  %v304_v24 = vld [vmem:[%s3684_s0 + $0x328] sm:$0xff]  ;;  %v303_v25 = vld [vmem:[%s3684_s0 + $0x320] sm:$0xff] }
  0xdf   :  { %1598 = vst.msk [vmem:[%s3686_s2 + $0x190] sm:$0xff] %vm1547_vm0, %v1405_v23 }
  0xe0   :  { %1588 = vst.msk [vmem:[%s3686_s2 + $0x140] sm:$0xff] %vm1547_vm0, %v1395_v26  ;;  %v302_v26 = vld [vmem:[%s3684_s0 + $0x318] sm:$0xff] }
  0xe1   :  { %1587 = vst.msk [vmem:[%s3686_s2 + $0x138] sm:$0xff] %vm1547_vm0, %v1394_v27  ;;  %v79_v27 = vld [vmem:[%s3685_s1 + $0x220] sm:$0xff] }
  0xe2   :  { %827 = vperm.xlu2 %1747, %v289_v28   ;;  %v69_v28 = vld [vmem:[%s3685_s1 + $0x1d0] sm:$0xff] }
  0xe3   :  { %822 = vperm.xlu1 %1746, %v288_v29   ;;  %817 = vperm.xlu0 %1745, %v287_v30   ;;  %v68_v29 = vld [vmem:[%s3685_s1 + $0x1c8] sm:$0xff] }
  0xe4   :  { %v663_v34 = vpop.permute.xlu2 %662 }
  0xe5   :  { %v1408_v35 = vmul.f32 %v663_v34, %v64_v31  ;;  %v613_v36 = vpop.permute.xlu1 %612  ;;  %v608_v37 = vpop.permute.xlu0 %607 }
  0xe6   :  { %v1398_v38 = vmul.f32 %v613_v36, %v54_v32  ;;  %v1397_v39 = vmul.f32 %v608_v37, %v53_v33  ;;  %v307_v36 = vld [vmem:[%s3684_s0 + $0x340] sm:$0xff]  ;;  %v306_v37 = vld [vmem:[%s3684_s0 + $0x338] sm:$0xff] }
  0xe7   :  { %1601 = vst.msk [vmem:[%s3686_s2 + $0x1a8] sm:$0xff] %vm1547_vm0, %v1408_v35 }
  0xe8   :  { %1591 = vst.msk [vmem:[%s3686_s2 + $0x158] sm:$0xff] %vm1547_vm0, %v1398_v38  ;;  %v305_v38 = vld [vmem:[%s3684_s0 + $0x330] sm:$0xff] }
  0xe9   :  { %1590 = vst.msk [vmem:[%s3686_s2 + $0x150] sm:$0xff] %vm1547_vm0, %v1397_v39  ;;  %v82_v39 = vld [vmem:[%s3685_s1 + $0x238] sm:$0xff] }
  0xea   :  { %842 = vperm.xlu2 %1747, %v292_v40   ;;  %v72_v40 = vld [vmem:[%s3685_s1 + $0x1e8] sm:$0xff] }
  0xeb   :  { %837 = vperm.xlu1 %1746, %v291_v41   ;;  %832 = vperm.xlu0 %1745, %v290_v42   ;;  %v71_v41 = vld [vmem:[%s3685_s1 + $0x1e0] sm:$0xff] }
  0xec   :  { %v678_v46 = vpop.permute.xlu2 %677 }
  0xed   :  { %v1411_v47 = vmul.f32 %v678_v46, %v67_v43  ;;  %v628_v48 = vpop.permute.xlu1 %627  ;;  %v623_v49 = vpop.permute.xlu0 %622 }
  0xee   :  { %v1401_v50 = vmul.f32 %v628_v48, %v57_v44  ;;  %v1400_v51 = vmul.f32 %v623_v49, %v56_v45  ;;  %v310_v48 = vld [vmem:[%s3684_s0 + $0x358] sm:$0xff]  ;;  %v309_v49 = vld [vmem:[%s3684_s0 + $0x350] sm:$0xff] }
  0xef   :  { %1604 = vst.msk [vmem:[%s3686_s2 + $0x1c0] sm:$0xff] %vm1547_vm0, %v1411_v47 }
  0xf0   :  { %1594 = vst.msk [vmem:[%s3686_s2 + $0x170] sm:$0xff] %vm1547_vm0, %v1401_v50  ;;  %v308_v50 = vld [vmem:[%s3684_s0 + $0x348] sm:$0xff] }
  0xf1   :  { %1593 = vst.msk [vmem:[%s3686_s2 + $0x168] sm:$0xff] %vm1547_vm0, %v1400_v51  ;;  %v85_v51 = vld [vmem:[%s3685_s1 + $0x250] sm:$0xff] }
  0xf2   :  { %857 = vperm.xlu2 %1747, %v295_v52   ;;  %v75_v52 = vld [vmem:[%s3685_s1 + $0x200] sm:$0xff] }
  0xf3   :  { %852 = vperm.xlu1 %1746, %v294_v53   ;;  %847 = vperm.xlu0 %1745, %v293_v54   ;;  %v74_v53 = vld [vmem:[%s3685_s1 + $0x1f8] sm:$0xff] }
  0xf4   :  { %v693_v58 = vpop.permute.xlu2 %692 }
  0xf5   :  { %v1414_v59 = vmul.f32 %v693_v58, %v70_v55  ;;  %v643_v60 = vpop.permute.xlu1 %642  ;;  %v638_v61 = vpop.permute.xlu0 %637 }
  0xf6   :  { %v1404_v62 = vmul.f32 %v643_v60, %v60_v56  ;;  %v1403_v63 = vmul.f32 %v638_v61, %v59_v57  ;;  %v313_v60 = vld [vmem:[%s3684_s0 + $0x370] sm:$0xff]  ;;  %v312_v61 = vld [vmem:[%s3684_s0 + $0x368] sm:$0xff] }
  0xf7   :  { %1607 = vst.msk [vmem:[%s3686_s2 + $0x1d8] sm:$0xff] %vm1547_vm0, %v1414_v59 }
  0xf8   :  { %1597 = vst.msk [vmem:[%s3686_s2 + $0x188] sm:$0xff] %vm1547_vm0, %v1404_v62  ;;  %v311_v62 = vld [vmem:[%s3684_s0 + $0x360] sm:$0xff] }
  0xf9   :  { %1596 = vst.msk [vmem:[%s3686_s2 + $0x180] sm:$0xff] %vm1547_vm0, %v1403_v63  ;;  %v88_v63 = vld [vmem:[%s3685_s1 + $0x268] sm:$0xff] }
  0xfa   :  { %872 = vperm.xlu2 %1747, %v298_v0   ;;  %v78_v0 = vld [vmem:[%s3685_s1 + $0x218] sm:$0xff] }
  0xfb   :  { %867 = vperm.xlu1 %1746, %v297_v1   ;;  %862 = vperm.xlu0 %1745, %v296_v2   ;;  %v77_v1 = vld [vmem:[%s3685_s1 + $0x210] sm:$0xff] }
  0xfc   :  { %v708_v6 = vpop.permute.xlu2 %707 }
  0xfd   :  { %v1417_v7 = vmul.f32 %v708_v6, %v73_v3  ;;  %v658_v8 = vpop.permute.xlu1 %657  ;;  %v653_v9 = vpop.permute.xlu0 %652 }
  0xfe   :  { %v1407_v10 = vmul.f32 %v658_v8, %v63_v4  ;;  %v1406_v11 = vmul.f32 %v653_v9, %v62_v5  ;;  %v316_v8 = vld [vmem:[%s3684_s0 + $0x388] sm:$0xff]  ;;  %v315_v9 = vld [vmem:[%s3684_s0 + $0x380] sm:$0xff] }
  0xff   :  { %1610 = vst.msk [vmem:[%s3686_s2 + $0x1f0] sm:$0xff] %vm1547_vm0, %v1417_v7 }
 0x100   :  { %1600 = vst.msk [vmem:[%s3686_s2 + $0x1a0] sm:$0xff] %vm1547_vm0, %v1407_v10  ;;  %v314_v10 = vld [vmem:[%s3684_s0 + $0x378] sm:$0xff] }
 0x101   :  { %1599 = vst.msk [vmem:[%s3686_s2 + $0x198] sm:$0xff] %vm1547_vm0, %v1406_v11  ;;  %v91_v11 = vld [vmem:[%s3685_s1 + $0x280] sm:$0xff] }
 0x102   :  { %887 = vperm.xlu2 %1747, %v301_v12   ;;  %v81_v12 = vld [vmem:[%s3685_s1 + $0x230] sm:$0xff] }
 0x103   :  { %882 = vperm.xlu1 %1746, %v300_v13   ;;  %877 = vperm.xlu0 %1745, %v299_v14   ;;  %v80_v13 = vld [vmem:[%s3685_s1 + $0x228] sm:$0xff] }
 0x104   :  { %v723_v18 = vpop.permute.xlu2 %722 }
 0x105   :  { %v1420_v19 = vmul.f32 %v723_v18, %v76_v15  ;;  %v673_v20 = vpop.permute.xlu1 %672  ;;  %v668_v21 = vpop.permute.xlu0 %667 }
 0x106   :  { %v1410_v22 = vmul.f32 %v673_v20, %v66_v16  ;;  %v1409_v23 = vmul.f32 %v668_v21, %v65_v17  ;;  %v319_v20 = vld [vmem:[%s3684_s0 + $0x3a0] sm:$0xff]  ;;  %v318_v21 = vld [vmem:[%s3684_s0 + $0x398] sm:$0xff] }
 0x107   :  { %1613 = vst.msk [vmem:[%s3686_s2 + $0x208] sm:$0xff] %vm1547_vm0, %v1420_v19 }
 0x108   :  { %1603 = vst.msk [vmem:[%s3686_s2 + $0x1b8] sm:$0xff] %vm1547_vm0, %v1410_v22  ;;  %v317_v22 = vld [vmem:[%s3684_s0 + $0x390] sm:$0xff] }
 0x109   :  { %1602 = vst.msk [vmem:[%s3686_s2 + $0x1b0] sm:$0xff] %vm1547_vm0, %v1409_v23  ;;  %v94_v23 = vld [vmem:[%s3685_s1 + $0x298] sm:$0xff] }
 0x10a   :  { %902 = vperm.xlu2 %1747, %v304_v24   ;;  %v84_v24 = vld [vmem:[%s3685_s1 + $0x248] sm:$0xff] }
 0x10b   :  { %897 = vperm.xlu1 %1746, %v303_v25   ;;  %892 = vperm.xlu0 %1745, %v302_v26   ;;  %v83_v25 = vld [vmem:[%s3685_s1 + $0x240] sm:$0xff] }
 0x10c   :  { %v738_v30 = vpop.permute.xlu2 %737 }
 0x10d   :  { %v1423_v31 = vmul.f32 %v738_v30, %v79_v27  ;;  %v688_v32 = vpop.permute.xlu1 %687  ;;  %v683_v33 = vpop.permute.xlu0 %682 }
 0x10e   :  { %v1413_v34 = vmul.f32 %v688_v32, %v69_v28  ;;  %v1412_v35 = vmul.f32 %v683_v33, %v68_v29  ;;  %v322_v32 = vld [vmem:[%s3684_s0 + $0x3b8] sm:$0xff]  ;;  %v321_v33 = vld [vmem:[%s3684_s0 + $0x3b0] sm:$0xff] }
 0x10f   :  { %1616 = vst.msk [vmem:[%s3686_s2 + $0x220] sm:$0xff] %vm1547_vm0, %v1423_v31 }
 0x110   :  { %1606 = vst.msk [vmem:[%s3686_s2 + $0x1d0] sm:$0xff] %vm1547_vm0, %v1413_v34  ;;  %v320_v34 = vld [vmem:[%s3684_s0 + $0x3a8] sm:$0xff] }
 0x111   :  { %1605 = vst.msk [vmem:[%s3686_s2 + $0x1c8] sm:$0xff] %vm1547_vm0, %v1412_v35  ;;  %v97_v35 = vld [vmem:[%s3685_s1 + $0x2b0] sm:$0xff] }
 0x112   :  { %917 = vperm.xlu2 %1747, %v307_v36   ;;  %v87_v36 = vld [vmem:[%s3685_s1 + $0x260] sm:$0xff] }
 0x113   :  { %912 = vperm.xlu1 %1746, %v306_v37   ;;  %907 = vperm.xlu0 %1745, %v305_v38   ;;  %v86_v37 = vld [vmem:[%s3685_s1 + $0x258] sm:$0xff] }
 0x114   :  { %v753_v42 = vpop.permute.xlu2 %752 }
 0x115   :  { %v1426_v43 = vmul.f32 %v753_v42, %v82_v39  ;;  %v703_v44 = vpop.permute.xlu1 %702  ;;  %v698_v45 = vpop.permute.xlu0 %697 }
 0x116   :  { %v1416_v46 = vmul.f32 %v703_v44, %v72_v40  ;;  %v1415_v47 = vmul.f32 %v698_v45, %v71_v41  ;;  %v325_v44 = vld [vmem:[%s3684_s0 + $0x3d0] sm:$0xff]  ;;  %v324_v45 = vld [vmem:[%s3684_s0 + $0x3c8] sm:$0xff] }
 0x117   :  { %1619 = vst.msk [vmem:[%s3686_s2 + $0x238] sm:$0xff] %vm1547_vm0, %v1426_v43 }
 0x118   :  { %1609 = vst.msk [vmem:[%s3686_s2 + $0x1e8] sm:$0xff] %vm1547_vm0, %v1416_v46  ;;  %v323_v46 = vld [vmem:[%s3684_s0 + $0x3c0] sm:$0xff] }
 0x119   :  { %1608 = vst.msk [vmem:[%s3686_s2 + $0x1e0] sm:$0xff] %vm1547_vm0, %v1415_v47  ;;  %v100_v47 = vld [vmem:[%s3685_s1 + $0x2c8] sm:$0xff] }
 0x11a   :  { %932 = vperm.xlu2 %1747, %v310_v48   ;;  %v90_v48 = vld [vmem:[%s3685_s1 + $0x278] sm:$0xff] }
 0x11b   :  { %927 = vperm.xlu1 %1746, %v309_v49   ;;  %922 = vperm.xlu0 %1745, %v308_v50   ;;  %v89_v49 = vld [vmem:[%s3685_s1 + $0x270] sm:$0xff] }
 0x11c   :  { %v768_v54 = vpop.permute.xlu2 %767 }
 0x11d   :  { %v1429_v55 = vmul.f32 %v768_v54, %v85_v51  ;;  %v718_v56 = vpop.permute.xlu1 %717  ;;  %v713_v57 = vpop.permute.xlu0 %712 }
 0x11e   :  { %v1419_v58 = vmul.f32 %v718_v56, %v75_v52  ;;  %v1418_v59 = vmul.f32 %v713_v57, %v74_v53  ;;  %v328_v56 = vld [vmem:[%s3684_s0 + $0x3e8] sm:$0xff]  ;;  %v327_v57 = vld [vmem:[%s3684_s0 + $0x3e0] sm:$0xff] }
 0x11f   :  { %1622 = vst.msk [vmem:[%s3686_s2 + $0x250] sm:$0xff] %vm1547_vm0, %v1429_v55 }
 0x120   :  { %1612 = vst.msk [vmem:[%s3686_s2 + $0x200] sm:$0xff] %vm1547_vm0, %v1419_v58  ;;  %v326_v58 = vld [vmem:[%s3684_s0 + $0x3d8] sm:$0xff] }
 0x121   :  { %1611 = vst.msk [vmem:[%s3686_s2 + $0x1f8] sm:$0xff] %vm1547_vm0, %v1418_v59  ;;  %v103_v59 = vld [vmem:[%s3685_s1 + $0x2e0] sm:$0xff] }
 0x122   :  { %947 = vperm.xlu2 %1747, %v313_v60   ;;  %v93_v60 = vld [vmem:[%s3685_s1 + $0x290] sm:$0xff] }
 0x123   :  { %942 = vperm.xlu1 %1746, %v312_v61   ;;  %937 = vperm.xlu0 %1745, %v311_v62   ;;  %v92_v61 = vld [vmem:[%s3685_s1 + $0x288] sm:$0xff] }
 0x124   :  { %v783_v2 = vpop.permute.xlu2 %782 }
 0x125   :  { %v1432_v3 = vmul.f32 %v783_v2, %v88_v63  ;;  %v733_v4 = vpop.permute.xlu1 %732  ;;  %v728_v5 = vpop.permute.xlu0 %727 }
 0x126   :  { %v1422_v6 = vmul.f32 %v733_v4, %v78_v0  ;;  %v1421_v7 = vmul.f32 %v728_v5, %v77_v1  ;;  %v331_v4 = vld [vmem:[%s3684_s0 + $0x400] sm:$0xff]  ;;  %v330_v5 = vld [vmem:[%s3684_s0 + $0x3f8] sm:$0xff] }
 0x127   :  { %1625 = vst.msk [vmem:[%s3686_s2 + $0x268] sm:$0xff] %vm1547_vm0, %v1432_v3 }
 0x128   :  { %1615 = vst.msk [vmem:[%s3686_s2 + $0x218] sm:$0xff] %vm1547_vm0, %v1422_v6  ;;  %v329_v6 = vld [vmem:[%s3684_s0 + $0x3f0] sm:$0xff] }
 0x129   :  { %1614 = vst.msk [vmem:[%s3686_s2 + $0x210] sm:$0xff] %vm1547_vm0, %v1421_v7  ;;  %v106_v7 = vld [vmem:[%s3685_s1 + $0x2f8] sm:$0xff] }
 0x12a   :  { %962 = vperm.xlu2 %1747, %v316_v8   ;;  %v96_v8 = vld [vmem:[%s3685_s1 + $0x2a8] sm:$0xff] }
 0x12b   :  { %957 = vperm.xlu1 %1746, %v315_v9   ;;  %952 = vperm.xlu0 %1745, %v314_v10   ;;  %v95_v9 = vld [vmem:[%s3685_s1 + $0x2a0] sm:$0xff] }
 0x12c   :  { %v798_v14 = vpop.permute.xlu2 %797 }
 0x12d   :  { %v1435_v15 = vmul.f32 %v798_v14, %v91_v11  ;;  %v748_v16 = vpop.permute.xlu1 %747  ;;  %v743_v17 = vpop.permute.xlu0 %742 }
 0x12e   :  { %v1425_v18 = vmul.f32 %v748_v16, %v81_v12  ;;  %v1424_v19 = vmul.f32 %v743_v17, %v80_v13  ;;  %v334_v16 = vld [vmem:[%s3684_s0 + $0x418] sm:$0xff]  ;;  %v333_v17 = vld [vmem:[%s3684_s0 + $0x410] sm:$0xff] }
 0x12f   :  { %1628 = vst.msk [vmem:[%s3686_s2 + $0x280] sm:$0xff] %vm1547_vm0, %v1435_v15 }
 0x130   :  { %1618 = vst.msk [vmem:[%s3686_s2 + $0x230] sm:$0xff] %vm1547_vm0, %v1425_v18  ;;  %v332_v18 = vld [vmem:[%s3684_s0 + $0x408] sm:$0xff] }
 0x131   :  { %1617 = vst.msk [vmem:[%s3686_s2 + $0x228] sm:$0xff] %vm1547_vm0, %v1424_v19  ;;  %v109_v19 = vld [vmem:[%s3685_s1 + $0x310] sm:$0xff] }
 0x132   :  { %977 = vperm.xlu2 %1747, %v319_v20   ;;  %v99_v20 = vld [vmem:[%s3685_s1 + $0x2c0] sm:$0xff] }
 0x133   :  { %972 = vperm.xlu1 %1746, %v318_v21   ;;  %967 = vperm.xlu0 %1745, %v317_v22   ;;  %v98_v21 = vld [vmem:[%s3685_s1 + $0x2b8] sm:$0xff] }
 0x134   :  { %v813_v26 = vpop.permute.xlu2 %812 }
 0x135   :  { %v1438_v27 = vmul.f32 %v813_v26, %v94_v23  ;;  %v763_v28 = vpop.permute.xlu1 %762  ;;  %v758_v29 = vpop.permute.xlu0 %757 }
 0x136   :  { %v1428_v30 = vmul.f32 %v763_v28, %v84_v24  ;;  %v1427_v31 = vmul.f32 %v758_v29, %v83_v25  ;;  %v337_v28 = vld [vmem:[%s3684_s0 + $0x430] sm:$0xff]  ;;  %v336_v29 = vld [vmem:[%s3684_s0 + $0x428] sm:$0xff] }
 0x137   :  { %1631 = vst.msk [vmem:[%s3686_s2 + $0x298] sm:$0xff] %vm1547_vm0, %v1438_v27 }
 0x138   :  { %1621 = vst.msk [vmem:[%s3686_s2 + $0x248] sm:$0xff] %vm1547_vm0, %v1428_v30  ;;  %v335_v30 = vld [vmem:[%s3684_s0 + $0x420] sm:$0xff] }
 0x139   :  { %1620 = vst.msk [vmem:[%s3686_s2 + $0x240] sm:$0xff] %vm1547_vm0, %v1427_v31  ;;  %v112_v31 = vld [vmem:[%s3685_s1 + $0x328] sm:$0xff] }
 0x13a   :  { %992 = vperm.xlu2 %1747, %v322_v32   ;;  %v102_v32 = vld [vmem:[%s3685_s1 + $0x2d8] sm:$0xff] }
 0x13b   :  { %987 = vperm.xlu1 %1746, %v321_v33   ;;  %982 = vperm.xlu0 %1745, %v320_v34   ;;  %v101_v33 = vld [vmem:[%s3685_s1 + $0x2d0] sm:$0xff] }
 0x13c   :  { %v828_v38 = vpop.permute.xlu2 %827 }
 0x13d   :  { %v1441_v39 = vmul.f32 %v828_v38, %v97_v35  ;;  %v778_v40 = vpop.permute.xlu1 %777  ;;  %v773_v41 = vpop.permute.xlu0 %772 }
 0x13e   :  { %v1431_v42 = vmul.f32 %v778_v40, %v87_v36  ;;  %v1430_v43 = vmul.f32 %v773_v41, %v86_v37  ;;  %v340_v40 = vld [vmem:[%s3684_s0 + $0x448] sm:$0xff]  ;;  %v339_v41 = vld [vmem:[%s3684_s0 + $0x440] sm:$0xff] }
 0x13f   :  { %1634 = vst.msk [vmem:[%s3686_s2 + $0x2b0] sm:$0xff] %vm1547_vm0, %v1441_v39 }
 0x140   :  { %1624 = vst.msk [vmem:[%s3686_s2 + $0x260] sm:$0xff] %vm1547_vm0, %v1431_v42  ;;  %v338_v42 = vld [vmem:[%s3684_s0 + $0x438] sm:$0xff] }
 0x141   :  { %1623 = vst.msk [vmem:[%s3686_s2 + $0x258] sm:$0xff] %vm1547_vm0, %v1430_v43  ;;  %v115_v43 = vld [vmem:[%s3685_s1 + $0x340] sm:$0xff] }
 0x142   :  { %1007 = vperm.xlu2 %1747, %v325_v44   ;;  %v105_v44 = vld [vmem:[%s3685_s1 + $0x2f0] sm:$0xff] }
 0x143   :  { %1002 = vperm.xlu1 %1746, %v324_v45   ;;  %997 = vperm.xlu0 %1745, %v323_v46   ;;  %v104_v45 = vld [vmem:[%s3685_s1 + $0x2e8] sm:$0xff] }
 0x144   :  { %v843_v50 = vpop.permute.xlu2 %842 }
 0x145   :  { %v1444_v51 = vmul.f32 %v843_v50, %v100_v47  ;;  %v793_v52 = vpop.permute.xlu1 %792  ;;  %v788_v53 = vpop.permute.xlu0 %787 }
 0x146   :  { %v1434_v54 = vmul.f32 %v793_v52, %v90_v48  ;;  %v1433_v55 = vmul.f32 %v788_v53, %v89_v49  ;;  %v343_v52 = vld [vmem:[%s3684_s0 + $0x460] sm:$0xff]  ;;  %v342_v53 = vld [vmem:[%s3684_s0 + $0x458] sm:$0xff] }
 0x147   :  { %1637 = vst.msk [vmem:[%s3686_s2 + $0x2c8] sm:$0xff] %vm1547_vm0, %v1444_v51 }
 0x148   :  { %1627 = vst.msk [vmem:[%s3686_s2 + $0x278] sm:$0xff] %vm1547_vm0, %v1434_v54  ;;  %v341_v54 = vld [vmem:[%s3684_s0 + $0x450] sm:$0xff] }
 0x149   :  { %1626 = vst.msk [vmem:[%s3686_s2 + $0x270] sm:$0xff] %vm1547_vm0, %v1433_v55  ;;  %v118_v55 = vld [vmem:[%s3685_s1 + $0x358] sm:$0xff] }
 0x14a   :  { %1022 = vperm.xlu2 %1747, %v328_v56   ;;  %v108_v56 = vld [vmem:[%s3685_s1 + $0x308] sm:$0xff] }
 0x14b   :  { %1017 = vperm.xlu1 %1746, %v327_v57   ;;  %1012 = vperm.xlu0 %1745, %v326_v58   ;;  %v107_v57 = vld [vmem:[%s3685_s1 + $0x300] sm:$0xff] }
 0x14c   :  { %v858_v62 = vpop.permute.xlu2 %857 }
 0x14d   :  { %v1447_v63 = vmul.f32 %v858_v62, %v103_v59  ;;  %v808_v0 = vpop.permute.xlu1 %807  ;;  %v803_v1 = vpop.permute.xlu0 %802 }
 0x14e   :  { %v1437_v2 = vmul.f32 %v808_v0, %v93_v60  ;;  %v1436_v3 = vmul.f32 %v803_v1, %v92_v61  ;;  %v346_v0 = vld [vmem:[%s3684_s0 + $0x478] sm:$0xff]  ;;  %v345_v1 = vld [vmem:[%s3684_s0 + $0x470] sm:$0xff] }
 0x14f   :  { %1640 = vst.msk [vmem:[%s3686_s2 + $0x2e0] sm:$0xff] %vm1547_vm0, %v1447_v63 }
 0x150   :  { %1630 = vst.msk [vmem:[%s3686_s2 + $0x290] sm:$0xff] %vm1547_vm0, %v1437_v2  ;;  %v344_v2 = vld [vmem:[%s3684_s0 + $0x468] sm:$0xff] }
 0x151   :  { %1629 = vst.msk [vmem:[%s3686_s2 + $0x288] sm:$0xff] %vm1547_vm0, %v1436_v3  ;;  %v121_v3 = vld [vmem:[%s3685_s1 + $0x370] sm:$0xff] }
 0x152   :  { %1037 = vperm.xlu2 %1747, %v331_v4   ;;  %v111_v4 = vld [vmem:[%s3685_s1 + $0x320] sm:$0xff] }
 0x153   :  { %1032 = vperm.xlu1 %1746, %v330_v5   ;;  %1027 = vperm.xlu0 %1745, %v329_v6   ;;  %v110_v5 = vld [vmem:[%s3685_s1 + $0x318] sm:$0xff] }
 0x154   :  { %v873_v10 = vpop.permute.xlu2 %872 }
 0x155   :  { %v1450_v11 = vmul.f32 %v873_v10, %v106_v7  ;;  %v823_v12 = vpop.permute.xlu1 %822  ;;  %v818_v13 = vpop.permute.xlu0 %817 }
 0x156   :  { %v1440_v14 = vmul.f32 %v823_v12, %v96_v8  ;;  %v1439_v15 = vmul.f32 %v818_v13, %v95_v9  ;;  %v349_v12 = vld [vmem:[%s3684_s0 + $0x490] sm:$0xff]  ;;  %v348_v13 = vld [vmem:[%s3684_s0 + $0x488] sm:$0xff] }
 0x157   :  { %1643 = vst.msk [vmem:[%s3686_s2 + $0x2f8] sm:$0xff] %vm1547_vm0, %v1450_v11 }
 0x158   :  { %1633 = vst.msk [vmem:[%s3686_s2 + $0x2a8] sm:$0xff] %vm1547_vm0, %v1440_v14  ;;  %v347_v14 = vld [vmem:[%s3684_s0 + $0x480] sm:$0xff] }
 0x159   :  { %1632 = vst.msk [vmem:[%s3686_s2 + $0x2a0] sm:$0xff] %vm1547_vm0, %v1439_v15  ;;  %v124_v15 = vld [vmem:[%s3685_s1 + $0x388] sm:$0xff] }
 0x15a   :  { %1052 = vperm.xlu2 %1747, %v334_v16   ;;  %v114_v16 = vld [vmem:[%s3685_s1 + $0x338] sm:$0xff] }
 0x15b   :  { %1047 = vperm.xlu1 %1746, %v333_v17   ;;  %1042 = vperm.xlu0 %1745, %v332_v18   ;;  %v113_v17 = vld [vmem:[%s3685_s1 + $0x330] sm:$0xff] }
 0x15c   :  { %v888_v22 = vpop.permute.xlu2 %887 }
 0x15d   :  { %v1453_v23 = vmul.f32 %v888_v22, %v109_v19  ;;  %v838_v24 = vpop.permute.xlu1 %837  ;;  %v833_v25 = vpop.permute.xlu0 %832 }
 0x15e   :  { %v1443_v26 = vmul.f32 %v838_v24, %v99_v20  ;;  %v1442_v27 = vmul.f32 %v833_v25, %v98_v21  ;;  %v352_v24 = vld [vmem:[%s3684_s0 + $0x4a8] sm:$0xff]  ;;  %v351_v25 = vld [vmem:[%s3684_s0 + $0x4a0] sm:$0xff] }
 0x15f   :  { %1646 = vst.msk [vmem:[%s3686_s2 + $0x310] sm:$0xff] %vm1547_vm0, %v1453_v23 }
 0x160   :  { %1636 = vst.msk [vmem:[%s3686_s2 + $0x2c0] sm:$0xff] %vm1547_vm0, %v1443_v26  ;;  %v350_v26 = vld [vmem:[%s3684_s0 + $0x498] sm:$0xff] }
 0x161   :  { %1635 = vst.msk [vmem:[%s3686_s2 + $0x2b8] sm:$0xff] %vm1547_vm0, %v1442_v27  ;;  %v127_v27 = vld [vmem:[%s3685_s1 + $0x3a0] sm:$0xff] }
 0x162   :  { %1067 = vperm.xlu2 %1747, %v337_v28   ;;  %v117_v28 = vld [vmem:[%s3685_s1 + $0x350] sm:$0xff] }
 0x163   :  { %1062 = vperm.xlu1 %1746, %v336_v29   ;;  %1057 = vperm.xlu0 %1745, %v335_v30   ;;  %v116_v29 = vld [vmem:[%s3685_s1 + $0x348] sm:$0xff] }
 0x164   :  { %v903_v34 = vpop.permute.xlu2 %902 }
 0x165   :  { %v1456_v35 = vmul.f32 %v903_v34, %v112_v31  ;;  %v853_v36 = vpop.permute.xlu1 %852  ;;  %v848_v37 = vpop.permute.xlu0 %847 }
 0x166   :  { %v1446_v38 = vmul.f32 %v853_v36, %v102_v32  ;;  %v1445_v39 = vmul.f32 %v848_v37, %v101_v33  ;;  %v355_v36 = vld [vmem:[%s3684_s0 + $0x4c0] sm:$0xff]  ;;  %v354_v37 = vld [vmem:[%s3684_s0 + $0x4b8] sm:$0xff] }
 0x167   :  { %1649 = vst.msk [vmem:[%s3686_s2 + $0x328] sm:$0xff] %vm1547_vm0, %v1456_v35 }
 0x168   :  { %1639 = vst.msk [vmem:[%s3686_s2 + $0x2d8] sm:$0xff] %vm1547_vm0, %v1446_v38  ;;  %v353_v38 = vld [vmem:[%s3684_s0 + $0x4b0] sm:$0xff] }
 0x169   :  { %1638 = vst.msk [vmem:[%s3686_s2 + $0x2d0] sm:$0xff] %vm1547_vm0, %v1445_v39  ;;  %v130_v39 = vld [vmem:[%s3685_s1 + $0x3b8] sm:$0xff] }
 0x16a   :  { %1082 = vperm.xlu2 %1747, %v340_v40   ;;  %v120_v40 = vld [vmem:[%s3685_s1 + $0x368] sm:$0xff] }
 0x16b   :  { %1077 = vperm.xlu1 %1746, %v339_v41   ;;  %1072 = vperm.xlu0 %1745, %v338_v42   ;;  %v119_v41 = vld [vmem:[%s3685_s1 + $0x360] sm:$0xff] }
 0x16c   :  { %v918_v46 = vpop.permute.xlu2 %917 }
 0x16d   :  { %v1459_v47 = vmul.f32 %v918_v46, %v115_v43  ;;  %v868_v48 = vpop.permute.xlu1 %867  ;;  %v863_v49 = vpop.permute.xlu0 %862 }
 0x16e   :  { %v1449_v50 = vmul.f32 %v868_v48, %v105_v44  ;;  %v1448_v51 = vmul.f32 %v863_v49, %v104_v45  ;;  %v358_v48 = vld [vmem:[%s3684_s0 + $0x4d8] sm:$0xff]  ;;  %v357_v49 = vld [vmem:[%s3684_s0 + $0x4d0] sm:$0xff] }
 0x16f   :  { %1652 = vst.msk [vmem:[%s3686_s2 + $0x340] sm:$0xff] %vm1547_vm0, %v1459_v47 }
 0x170   :  { %1642 = vst.msk [vmem:[%s3686_s2 + $0x2f0] sm:$0xff] %vm1547_vm0, %v1449_v50  ;;  %v356_v50 = vld [vmem:[%s3684_s0 + $0x4c8] sm:$0xff] }
 0x171   :  { %1641 = vst.msk [vmem:[%s3686_s2 + $0x2e8] sm:$0xff] %vm1547_vm0, %v1448_v51  ;;  %v133_v51 = vld [vmem:[%s3685_s1 + $0x3d0] sm:$0xff] }
 0x172   :  { %1097 = vperm.xlu2 %1747, %v343_v52   ;;  %v123_v52 = vld [vmem:[%s3685_s1 + $0x380] sm:$0xff] }
 0x173   :  { %1092 = vperm.xlu1 %1746, %v342_v53   ;;  %1087 = vperm.xlu0 %1745, %v341_v54   ;;  %v122_v53 = vld [vmem:[%s3685_s1 + $0x378] sm:$0xff] }
 0x174   :  { %v933_v58 = vpop.permute.xlu2 %932 }
 0x175   :  { %v1462_v59 = vmul.f32 %v933_v58, %v118_v55  ;;  %v883_v60 = vpop.permute.xlu1 %882  ;;  %v878_v61 = vpop.permute.xlu0 %877 }
 0x176   :  { %v1452_v62 = vmul.f32 %v883_v60, %v108_v56  ;;  %v1451_v63 = vmul.f32 %v878_v61, %v107_v57  ;;  %v361_v60 = vld [vmem:[%s3684_s0 + $0x4f0] sm:$0xff]  ;;  %v360_v61 = vld [vmem:[%s3684_s0 + $0x4e8] sm:$0xff] }
 0x177   :  { %1655 = vst.msk [vmem:[%s3686_s2 + $0x358] sm:$0xff] %vm1547_vm0, %v1462_v59 }
 0x178   :  { %1645 = vst.msk [vmem:[%s3686_s2 + $0x308] sm:$0xff] %vm1547_vm0, %v1452_v62  ;;  %v359_v62 = vld [vmem:[%s3684_s0 + $0x4e0] sm:$0xff] }
 0x179   :  { %1644 = vst.msk [vmem:[%s3686_s2 + $0x300] sm:$0xff] %vm1547_vm0, %v1451_v63  ;;  %v136_v63 = vld [vmem:[%s3685_s1 + $0x3e8] sm:$0xff] }
 0x17a   :  { %1112 = vperm.xlu2 %1747, %v346_v0   ;;  %v126_v0 = vld [vmem:[%s3685_s1 + $0x398] sm:$0xff] }
 0x17b   :  { %1107 = vperm.xlu1 %1746, %v345_v1   ;;  %1102 = vperm.xlu0 %1745, %v344_v2   ;;  %v125_v1 = vld [vmem:[%s3685_s1 + $0x390] sm:$0xff] }
 0x17c   :  { %v948_v6 = vpop.permute.xlu2 %947 }
 0x17d   :  { %v1465_v7 = vmul.f32 %v948_v6, %v121_v3  ;;  %v898_v8 = vpop.permute.xlu1 %897  ;;  %v893_v9 = vpop.permute.xlu0 %892 }
 0x17e   :  { %v1455_v10 = vmul.f32 %v898_v8, %v111_v4  ;;  %v1454_v11 = vmul.f32 %v893_v9, %v110_v5  ;;  %v364_v8 = vld [vmem:[%s3684_s0 + $0x508] sm:$0xff]  ;;  %v363_v9 = vld [vmem:[%s3684_s0 + $0x500] sm:$0xff] }
 0x17f   :  { %1658 = vst.msk [vmem:[%s3686_s2 + $0x370] sm:$0xff] %vm1547_vm0, %v1465_v7 }
 0x180   :  { %1648 = vst.msk [vmem:[%s3686_s2 + $0x320] sm:$0xff] %vm1547_vm0, %v1455_v10  ;;  %v362_v10 = vld [vmem:[%s3684_s0 + $0x4f8] sm:$0xff] }
 0x181   :  { %1647 = vst.msk [vmem:[%s3686_s2 + $0x318] sm:$0xff] %vm1547_vm0, %v1454_v11  ;;  %v139_v11 = vld [vmem:[%s3685_s1 + $0x400] sm:$0xff] }
 0x182   :  { %1127 = vperm.xlu2 %1747, %v349_v12   ;;  %v129_v12 = vld [vmem:[%s3685_s1 + $0x3b0] sm:$0xff] }
 0x183   :  { %1122 = vperm.xlu1 %1746, %v348_v13   ;;  %1117 = vperm.xlu0 %1745, %v347_v14   ;;  %v128_v13 = vld [vmem:[%s3685_s1 + $0x3a8] sm:$0xff] }
 0x184   :  { %v963_v18 = vpop.permute.xlu2 %962 }
 0x185   :  { %v1468_v19 = vmul.f32 %v963_v18, %v124_v15  ;;  %v913_v20 = vpop.permute.xlu1 %912  ;;  %v908_v21 = vpop.permute.xlu0 %907 }
 0x186   :  { %v1458_v22 = vmul.f32 %v913_v20, %v114_v16  ;;  %v1457_v23 = vmul.f32 %v908_v21, %v113_v17  ;;  %v367_v20 = vld [vmem:[%s3684_s0 + $0x520] sm:$0xff]  ;;  %v366_v21 = vld [vmem:[%s3684_s0 + $0x518] sm:$0xff] }
 0x187   :  { %1661 = vst.msk [vmem:[%s3686_s2 + $0x388] sm:$0xff] %vm1547_vm0, %v1468_v19 }
 0x188   :  { %1651 = vst.msk [vmem:[%s3686_s2 + $0x338] sm:$0xff] %vm1547_vm0, %v1458_v22  ;;  %v365_v22 = vld [vmem:[%s3684_s0 + $0x510] sm:$0xff] }
 0x189   :  { %1650 = vst.msk [vmem:[%s3686_s2 + $0x330] sm:$0xff] %vm1547_vm0, %v1457_v23  ;;  %v142_v23 = vld [vmem:[%s3685_s1 + $0x418] sm:$0xff] }
 0x18a   :  { %1142 = vperm.xlu2 %1747, %v352_v24   ;;  %v132_v24 = vld [vmem:[%s3685_s1 + $0x3c8] sm:$0xff] }
 0x18b   :  { %1137 = vperm.xlu1 %1746, %v351_v25   ;;  %1132 = vperm.xlu0 %1745, %v350_v26   ;;  %v131_v25 = vld [vmem:[%s3685_s1 + $0x3c0] sm:$0xff] }
 0x18c   :  { %v978_v30 = vpop.permute.xlu2 %977 }
 0x18d   :  { %v1471_v31 = vmul.f32 %v978_v30, %v127_v27  ;;  %v928_v32 = vpop.permute.xlu1 %927  ;;  %v923_v33 = vpop.permute.xlu0 %922 }
 0x18e   :  { %v1461_v34 = vmul.f32 %v928_v32, %v117_v28  ;;  %v1460_v35 = vmul.f32 %v923_v33, %v116_v29  ;;  %v370_v32 = vld [vmem:[%s3684_s0 + $0x538] sm:$0xff]  ;;  %v369_v33 = vld [vmem:[%s3684_s0 + $0x530] sm:$0xff] }
 0x18f   :  { %1664 = vst.msk [vmem:[%s3686_s2 + $0x3a0] sm:$0xff] %vm1547_vm0, %v1471_v31 }
 0x190   :  { %1654 = vst.msk [vmem:[%s3686_s2 + $0x350] sm:$0xff] %vm1547_vm0, %v1461_v34  ;;  %v368_v34 = vld [vmem:[%s3684_s0 + $0x528] sm:$0xff] }
 0x191   :  { %1653 = vst.msk [vmem:[%s3686_s2 + $0x348] sm:$0xff] %vm1547_vm0, %v1460_v35  ;;  %v145_v35 = vld [vmem:[%s3685_s1 + $0x430] sm:$0xff] }
 0x192   :  { %1157 = vperm.xlu2 %1747, %v355_v36   ;;  %v135_v36 = vld [vmem:[%s3685_s1 + $0x3e0] sm:$0xff] }
 0x193   :  { %1152 = vperm.xlu1 %1746, %v354_v37   ;;  %1147 = vperm.xlu0 %1745, %v353_v38   ;;  %v134_v37 = vld [vmem:[%s3685_s1 + $0x3d8] sm:$0xff] }
 0x194   :  { %v993_v42 = vpop.permute.xlu2 %992 }
 0x195   :  { %v1474_v43 = vmul.f32 %v993_v42, %v130_v39  ;;  %v943_v44 = vpop.permute.xlu1 %942  ;;  %v938_v45 = vpop.permute.xlu0 %937 }
 0x196   :  { %v1464_v46 = vmul.f32 %v943_v44, %v120_v40  ;;  %v1463_v47 = vmul.f32 %v938_v45, %v119_v41  ;;  %v373_v44 = vld [vmem:[%s3684_s0 + $0x550] sm:$0xff]  ;;  %v372_v45 = vld [vmem:[%s3684_s0 + $0x548] sm:$0xff] }
 0x197   :  { %1667 = vst.msk [vmem:[%s3686_s2 + $0x3b8] sm:$0xff] %vm1547_vm0, %v1474_v43 }
 0x198   :  { %1657 = vst.msk [vmem:[%s3686_s2 + $0x368] sm:$0xff] %vm1547_vm0, %v1464_v46  ;;  %v371_v46 = vld [vmem:[%s3684_s0 + $0x540] sm:$0xff] }
 0x199   :  { %1656 = vst.msk [vmem:[%s3686_s2 + $0x360] sm:$0xff] %vm1547_vm0, %v1463_v47  ;;  %v148_v47 = vld [vmem:[%s3685_s1 + $0x448] sm:$0xff] }
 0x19a   :  { %1172 = vperm.xlu2 %1747, %v358_v48   ;;  %v138_v48 = vld [vmem:[%s3685_s1 + $0x3f8] sm:$0xff] }
 0x19b   :  { %1167 = vperm.xlu1 %1746, %v357_v49   ;;  %1162 = vperm.xlu0 %1745, %v356_v50   ;;  %v137_v49 = vld [vmem:[%s3685_s1 + $0x3f0] sm:$0xff] }
 0x19c   :  { %v1008_v54 = vpop.permute.xlu2 %1007 }
 0x19d   :  { %v1477_v55 = vmul.f32 %v1008_v54, %v133_v51  ;;  %v958_v56 = vpop.permute.xlu1 %957  ;;  %v953_v57 = vpop.permute.xlu0 %952 }
 0x19e   :  { %v1467_v58 = vmul.f32 %v958_v56, %v123_v52  ;;  %v1466_v59 = vmul.f32 %v953_v57, %v122_v53  ;;  %v376_v56 = vld [vmem:[%s3684_s0 + $0x568] sm:$0xff]  ;;  %v375_v57 = vld [vmem:[%s3684_s0 + $0x560] sm:$0xff] }
 0x19f   :  { %1670 = vst.msk [vmem:[%s3686_s2 + $0x3d0] sm:$0xff] %vm1547_vm0, %v1477_v55 }
 0x1a0   :  { %1660 = vst.msk [vmem:[%s3686_s2 + $0x380] sm:$0xff] %vm1547_vm0, %v1467_v58  ;;  %v374_v58 = vld [vmem:[%s3684_s0 + $0x558] sm:$0xff] }
 0x1a1   :  { %1659 = vst.msk [vmem:[%s3686_s2 + $0x378] sm:$0xff] %vm1547_vm0, %v1466_v59  ;;  %v151_v59 = vld [vmem:[%s3685_s1 + $0x460] sm:$0xff] }
 0x1a2   :  { %1187 = vperm.xlu2 %1747, %v361_v60   ;;  %v141_v60 = vld [vmem:[%s3685_s1 + $0x410] sm:$0xff] }
 0x1a3   :  { %1182 = vperm.xlu1 %1746, %v360_v61   ;;  %1177 = vperm.xlu0 %1745, %v359_v62   ;;  %v140_v61 = vld [vmem:[%s3685_s1 + $0x408] sm:$0xff] }
 0x1a4   :  { %v1023_v2 = vpop.permute.xlu2 %1022 }
 0x1a5   :  { %v1480_v3 = vmul.f32 %v1023_v2, %v136_v63  ;;  %v973_v4 = vpop.permute.xlu1 %972  ;;  %v968_v5 = vpop.permute.xlu0 %967 }
 0x1a6   :  { %v1470_v6 = vmul.f32 %v973_v4, %v126_v0  ;;  %v1469_v7 = vmul.f32 %v968_v5, %v125_v1  ;;  %v379_v4 = vld [vmem:[%s3684_s0 + $0x580] sm:$0xff]  ;;  %v378_v5 = vld [vmem:[%s3684_s0 + $0x578] sm:$0xff] }
 0x1a7   :  { %1673 = vst.msk [vmem:[%s3686_s2 + $0x3e8] sm:$0xff] %vm1547_vm0, %v1480_v3 }
 0x1a8   :  { %1663 = vst.msk [vmem:[%s3686_s2 + $0x398] sm:$0xff] %vm1547_vm0, %v1470_v6  ;;  %v377_v6 = vld [vmem:[%s3684_s0 + $0x570] sm:$0xff] }
 0x1a9   :  { %1662 = vst.msk [vmem:[%s3686_s2 + $0x390] sm:$0xff] %vm1547_vm0, %v1469_v7  ;;  %v154_v7 = vld [vmem:[%s3685_s1 + $0x478] sm:$0xff] }
 0x1aa   :  { %1202 = vperm.xlu2 %1747, %v364_v8   ;;  %v144_v8 = vld [vmem:[%s3685_s1 + $0x428] sm:$0xff] }
 0x1ab   :  { %1197 = vperm.xlu1 %1746, %v363_v9   ;;  %1192 = vperm.xlu0 %1745, %v362_v10   ;;  %v143_v9 = vld [vmem:[%s3685_s1 + $0x420] sm:$0xff] }
 0x1ac   :  { %v1038_v14 = vpop.permute.xlu2 %1037 }
 0x1ad   :  { %v1483_v15 = vmul.f32 %v1038_v14, %v139_v11  ;;  %v988_v16 = vpop.permute.xlu1 %987  ;;  %v983_v17 = vpop.permute.xlu0 %982 }
 0x1ae   :  { %v1473_v18 = vmul.f32 %v988_v16, %v129_v12  ;;  %v1472_v19 = vmul.f32 %v983_v17, %v128_v13  ;;  %v382_v16 = vld [vmem:[%s3684_s0 + $0x598] sm:$0xff]  ;;  %v381_v17 = vld [vmem:[%s3684_s0 + $0x590] sm:$0xff] }
 0x1af   :  { %1676 = vst.msk [vmem:[%s3686_s2 + $0x400] sm:$0xff] %vm1547_vm0, %v1483_v15 }
 0x1b0   :  { %1666 = vst.msk [vmem:[%s3686_s2 + $0x3b0] sm:$0xff] %vm1547_vm0, %v1473_v18  ;;  %v380_v18 = vld [vmem:[%s3684_s0 + $0x588] sm:$0xff] }
 0x1b1   :  { %1665 = vst.msk [vmem:[%s3686_s2 + $0x3a8] sm:$0xff] %vm1547_vm0, %v1472_v19  ;;  %v157_v19 = vld [vmem:[%s3685_s1 + $0x490] sm:$0xff] }
 0x1b2   :  { %1217 = vperm.xlu2 %1747, %v367_v20   ;;  %v147_v20 = vld [vmem:[%s3685_s1 + $0x440] sm:$0xff] }
 0x1b3   :  { %1212 = vperm.xlu1 %1746, %v366_v21   ;;  %1207 = vperm.xlu0 %1745, %v365_v22   ;;  %v146_v21 = vld [vmem:[%s3685_s1 + $0x438] sm:$0xff] }
 0x1b4   :  { %v1053_v26 = vpop.permute.xlu2 %1052 }
 0x1b5   :  { %v1486_v27 = vmul.f32 %v1053_v26, %v142_v23  ;;  %v1003_v28 = vpop.permute.xlu1 %1002  ;;  %v998_v29 = vpop.permute.xlu0 %997 }
 0x1b6   :  { %v1476_v30 = vmul.f32 %v1003_v28, %v132_v24  ;;  %v1475_v31 = vmul.f32 %v998_v29, %v131_v25  ;;  %v385_v28 = vld [vmem:[%s3684_s0 + $0x5b0] sm:$0xff]  ;;  %v384_v29 = vld [vmem:[%s3684_s0 + $0x5a8] sm:$0xff] }
 0x1b7   :  { %1679 = vst.msk [vmem:[%s3686_s2 + $0x418] sm:$0xff] %vm1547_vm0, %v1486_v27 }
 0x1b8   :  { %1669 = vst.msk [vmem:[%s3686_s2 + $0x3c8] sm:$0xff] %vm1547_vm0, %v1476_v30  ;;  %v383_v30 = vld [vmem:[%s3684_s0 + $0x5a0] sm:$0xff] }
 0x1b9   :  { %1668 = vst.msk [vmem:[%s3686_s2 + $0x3c0] sm:$0xff] %vm1547_vm0, %v1475_v31  ;;  %v160_v31 = vld [vmem:[%s3685_s1 + $0x4a8] sm:$0xff] }
 0x1ba   :  { %1232 = vperm.xlu2 %1747, %v370_v32   ;;  %v150_v32 = vld [vmem:[%s3685_s1 + $0x458] sm:$0xff] }
 0x1bb   :  { %1227 = vperm.xlu1 %1746, %v369_v33   ;;  %1222 = vperm.xlu0 %1745, %v368_v34   ;;  %v149_v33 = vld [vmem:[%s3685_s1 + $0x450] sm:$0xff] }
 0x1bc   :  { %v1068_v38 = vpop.permute.xlu2 %1067 }
 0x1bd   :  { %v1489_v39 = vmul.f32 %v1068_v38, %v145_v35  ;;  %v1018_v40 = vpop.permute.xlu1 %1017  ;;  %v1013_v41 = vpop.permute.xlu0 %1012 }
 0x1be   :  { %v1479_v42 = vmul.f32 %v1018_v40, %v135_v36  ;;  %v1478_v43 = vmul.f32 %v1013_v41, %v134_v37  ;;  %v388_v40 = vld [vmem:[%s3684_s0 + $0x5c8] sm:$0xff]  ;;  %v387_v41 = vld [vmem:[%s3684_s0 + $0x5c0] sm:$0xff] }
 0x1bf   :  { %1682 = vst.msk [vmem:[%s3686_s2 + $0x430] sm:$0xff] %vm1547_vm0, %v1489_v39 }
 0x1c0   :  { %1672 = vst.msk [vmem:[%s3686_s2 + $0x3e0] sm:$0xff] %vm1547_vm0, %v1479_v42  ;;  %v386_v42 = vld [vmem:[%s3684_s0 + $0x5b8] sm:$0xff] }
 0x1c1   :  { %1671 = vst.msk [vmem:[%s3686_s2 + $0x3d8] sm:$0xff] %vm1547_vm0, %v1478_v43  ;;  %v163_v43 = vld [vmem:[%s3685_s1 + $0x4c0] sm:$0xff] }
 0x1c2   :  { %1247 = vperm.xlu2 %1747, %v373_v44   ;;  %v153_v44 = vld [vmem:[%s3685_s1 + $0x470] sm:$0xff] }
 0x1c3   :  { %1242 = vperm.xlu1 %1746, %v372_v45   ;;  %1237 = vperm.xlu0 %1745, %v371_v46   ;;  %v152_v45 = vld [vmem:[%s3685_s1 + $0x468] sm:$0xff] }
 0x1c4   :  { %v1083_v50 = vpop.permute.xlu2 %1082 }
 0x1c5   :  { %v1492_v51 = vmul.f32 %v1083_v50, %v148_v47  ;;  %v1033_v52 = vpop.permute.xlu1 %1032  ;;  %v1028_v53 = vpop.permute.xlu0 %1027 }
 0x1c6   :  { %v1482_v54 = vmul.f32 %v1033_v52, %v138_v48  ;;  %v1481_v55 = vmul.f32 %v1028_v53, %v137_v49  ;;  %v391_v52 = vld [vmem:[%s3684_s0 + $0x5e0] sm:$0xff]  ;;  %v390_v53 = vld [vmem:[%s3684_s0 + $0x5d8] sm:$0xff] }
 0x1c7   :  { %1685 = vst.msk [vmem:[%s3686_s2 + $0x448] sm:$0xff] %vm1547_vm0, %v1492_v51 }
 0x1c8   :  { %1675 = vst.msk [vmem:[%s3686_s2 + $0x3f8] sm:$0xff] %vm1547_vm0, %v1482_v54  ;;  %v389_v54 = vld [vmem:[%s3684_s0 + $0x5d0] sm:$0xff] }
 0x1c9   :  { %1674 = vst.msk [vmem:[%s3686_s2 + $0x3f0] sm:$0xff] %vm1547_vm0, %v1481_v55  ;;  %v166_v55 = vld [vmem:[%s3685_s1 + $0x4d8] sm:$0xff] }
 0x1ca   :  { %1262 = vperm.xlu2 %1747, %v376_v56   ;;  %v156_v56 = vld [vmem:[%s3685_s1 + $0x488] sm:$0xff] }
 0x1cb   :  { %1257 = vperm.xlu1 %1746, %v375_v57   ;;  %1252 = vperm.xlu0 %1745, %v374_v58   ;;  %v155_v57 = vld [vmem:[%s3685_s1 + $0x480] sm:$0xff] }
 0x1cc   :  { %v1098_v62 = vpop.permute.xlu2 %1097 }
 0x1cd   :  { %v1495_v63 = vmul.f32 %v1098_v62, %v151_v59  ;;  %v1048_v0 = vpop.permute.xlu1 %1047  ;;  %v1043_v1 = vpop.permute.xlu0 %1042 }
 0x1ce   :  { %v1485_v2 = vmul.f32 %v1048_v0, %v141_v60  ;;  %v1484_v3 = vmul.f32 %v1043_v1, %v140_v61  ;;  %v394_v0 = vld [vmem:[%s3684_s0 + $0x5f8] sm:$0xff]  ;;  %v393_v1 = vld [vmem:[%s3684_s0 + $0x5f0] sm:$0xff] }
 0x1cf   :  { %1688 = vst.msk [vmem:[%s3686_s2 + $0x460] sm:$0xff] %vm1547_vm0, %v1495_v63 }
 0x1d0   :  { %1678 = vst.msk [vmem:[%s3686_s2 + $0x410] sm:$0xff] %vm1547_vm0, %v1485_v2  ;;  %v392_v2 = vld [vmem:[%s3684_s0 + $0x5e8] sm:$0xff] }
 0x1d1   :  { %1677 = vst.msk [vmem:[%s3686_s2 + $0x408] sm:$0xff] %vm1547_vm0, %v1484_v3  ;;  %v169_v3 = vld [vmem:[%s3685_s1 + $0x4f0] sm:$0xff] }
 0x1d2   :  { %1277 = vperm.xlu2 %1747, %v379_v4   ;;  %v159_v4 = vld [vmem:[%s3685_s1 + $0x4a0] sm:$0xff] }
 0x1d3   :  { %1272 = vperm.xlu1 %1746, %v378_v5   ;;  %1267 = vperm.xlu0 %1745, %v377_v6   ;;  %v158_v5 = vld [vmem:[%s3685_s1 + $0x498] sm:$0xff] }
 0x1d4   :  { %v1113_v10 = vpop.permute.xlu2 %1112 }
 0x1d5   :  { %v1498_v11 = vmul.f32 %v1113_v10, %v154_v7  ;;  %v1063_v12 = vpop.permute.xlu1 %1062  ;;  %v1058_v13 = vpop.permute.xlu0 %1057 }
 0x1d6   :  { %v1488_v14 = vmul.f32 %v1063_v12, %v144_v8  ;;  %v1487_v15 = vmul.f32 %v1058_v13, %v143_v9  ;;  %v172_v12 = vld [vmem:[%s3685_s1 + $0x508] sm:$0xff]  ;;  %v162_v13 = vld [vmem:[%s3685_s1 + $0x4b8] sm:$0xff] }
 0x1d7   :  { %1691 = vst.msk [vmem:[%s3686_s2 + $0x478] sm:$0xff] %vm1547_vm0, %v1498_v11 }
 0x1d8   :  { %1681 = vst.msk [vmem:[%s3686_s2 + $0x428] sm:$0xff] %vm1547_vm0, %v1488_v14  ;;  %v161_v14 = vld [vmem:[%s3685_s1 + $0x4b0] sm:$0xff] }
 0x1d9   :  { %1680 = vst.msk [vmem:[%s3686_s2 + $0x420] sm:$0xff] %vm1547_vm0, %v1487_v15 }
 0x1da   :  { %1292 = vperm.xlu2 %1747, %v382_v16  }
 0x1db   :  { %1287 = vperm.xlu1 %1746, %v381_v17   ;;  %1282 = vperm.xlu0 %1745, %v380_v18  }
 0x1dc   :  { %v1128_v22 = vpop.permute.xlu2 %1127 }
 0x1dd   :  { %v1501_v23 = vmul.f32 %v1128_v22, %v157_v19  ;;  %v1078_v24 = vpop.permute.xlu1 %1077  ;;  %v1073_v25 = vpop.permute.xlu0 %1072  ;;  %v165_v22 = vld [vmem:[%s3685_s1 + $0x4d0] sm:$0xff] }
 0x1de   :  { %v1491_v26 = vmul.f32 %v1078_v24, %v147_v20  ;;  %v1490_v27 = vmul.f32 %v1073_v25, %v146_v21  ;;  %v175_v21 = vld [vmem:[%s3685_s1 + $0x520] sm:$0xff] }
 0x1df   :  { %1694 = vst.msk [vmem:[%s3686_s2 + $0x490] sm:$0xff] %vm1547_vm0, %v1501_v23  ;;  %v164_v23 = vld [vmem:[%s3685_s1 + $0x4c8] sm:$0xff] }
 0x1e0   :  { %1684 = vst.msk [vmem:[%s3686_s2 + $0x440] sm:$0xff] %vm1547_vm0, %v1491_v26 }
 0x1e1   :  { %1683 = vst.msk [vmem:[%s3686_s2 + $0x438] sm:$0xff] %vm1547_vm0, %v1490_v27 }
 0x1e2   :  { %1307 = vperm.xlu2 %1747, %v385_v28  }
 0x1e3   :  { %1302 = vperm.xlu1 %1746, %v384_v29   ;;  %1297 = vperm.xlu0 %1745, %v383_v30   ;;  %v178_v30 = vld [vmem:[%s3685_s1 + $0x538] sm:$0xff] }
 0x1e4   :  { %v1143_v34 = vpop.permute.xlu2 %1142 }
 0x1e5   :  { %v1504_v35 = vmul.f32 %v1143_v34, %v160_v31  ;;  %v1093_v36 = vpop.permute.xlu1 %1092  ;;  %v1088_v37 = vpop.permute.xlu0 %1087  ;;  %v168_v31 = vld [vmem:[%s3685_s1 + $0x4e8] sm:$0xff] }
 0x1e6   :  { %v1494_v38 = vmul.f32 %v1093_v36, %v150_v32  ;;  %v1493_v39 = vmul.f32 %v1088_v37, %v149_v33  ;;  %v167_v32 = vld [vmem:[%s3685_s1 + $0x4e0] sm:$0xff] }
 0x1e7   :  { %1697 = vst.msk [vmem:[%s3686_s2 + $0x4a8] sm:$0xff] %vm1547_vm0, %v1504_v35 }
 0x1e8   :  { %1687 = vst.msk [vmem:[%s3686_s2 + $0x458] sm:$0xff] %vm1547_vm0, %v1494_v38 }
 0x1e9   :  { %1686 = vst.msk [vmem:[%s3686_s2 + $0x450] sm:$0xff] %vm1547_vm0, %v1493_v39  ;;  %v181_v39 = vld [vmem:[%s3685_s1 + $0x550] sm:$0xff] }
 0x1ea   :  { %1322 = vperm.xlu2 %1747, %v388_v40   ;;  %v171_v40 = vld [vmem:[%s3685_s1 + $0x500] sm:$0xff] }
 0x1eb   :  { %1317 = vperm.xlu1 %1746, %v387_v41   ;;  %1312 = vperm.xlu0 %1745, %v386_v42   ;;  %v170_v41 = vld [vmem:[%s3685_s1 + $0x4f8] sm:$0xff] }
 0x1ec   :  { %v1158_v46 = vpop.permute.xlu2 %1157 }
 0x1ed   :  { %v1507_v47 = vmul.f32 %v1158_v46, %v163_v43  ;;  %v1108_v48 = vpop.permute.xlu1 %1107  ;;  %v1103_v49 = vpop.permute.xlu0 %1102 }
 0x1ee   :  { %v1497_v50 = vmul.f32 %v1108_v48, %v153_v44  ;;  %v1496_v51 = vmul.f32 %v1103_v49, %v152_v45  ;;  %v184_v48 = vld [vmem:[%s3685_s1 + $0x568] sm:$0xff]  ;;  %v174_v49 = vld [vmem:[%s3685_s1 + $0x518] sm:$0xff] }
 0x1ef   :  { %1700 = vst.msk [vmem:[%s3686_s2 + $0x4c0] sm:$0xff] %vm1547_vm0, %v1507_v47 }
 0x1f0   :  { %1690 = vst.msk [vmem:[%s3686_s2 + $0x470] sm:$0xff] %vm1547_vm0, %v1497_v50  ;;  %v173_v50 = vld [vmem:[%s3685_s1 + $0x510] sm:$0xff] }
 0x1f1   :  { %1689 = vst.msk [vmem:[%s3686_s2 + $0x468] sm:$0xff] %vm1547_vm0, %v1496_v51 }
 0x1f2   :  { %1337 = vperm.xlu2 %1747, %v391_v52  }
 0x1f3   :  { %1332 = vperm.xlu1 %1746, %v390_v53   ;;  %1327 = vperm.xlu0 %1745, %v389_v54  }
 0x1f4   :  { %v1173_v58 = vpop.permute.xlu2 %1172 }
 0x1f5   :  { %v1510_v59 = vmul.f32 %v1173_v58, %v166_v55  ;;  %v1123_v60 = vpop.permute.xlu1 %1122  ;;  %v1118_v61 = vpop.permute.xlu0 %1117  ;;  %v177_v58 = vld [vmem:[%s3685_s1 + $0x530] sm:$0xff] }
 0x1f6   :  { %v1500_v62 = vmul.f32 %v1123_v60, %v156_v56  ;;  %v1499_v63 = vmul.f32 %v1118_v61, %v155_v57  ;;  %v187_v57 = vld [vmem:[%s3685_s1 + $0x580] sm:$0xff] }
 0x1f7   :  { %1703 = vst.msk [vmem:[%s3686_s2 + $0x4d8] sm:$0xff] %vm1547_vm0, %v1510_v59  ;;  %v176_v59 = vld [vmem:[%s3685_s1 + $0x528] sm:$0xff] }
 0x1f8   :  { %1693 = vst.msk [vmem:[%s3686_s2 + $0x488] sm:$0xff] %vm1547_vm0, %v1500_v62 }
 0x1f9   :  { %1692 = vst.msk [vmem:[%s3686_s2 + $0x480] sm:$0xff] %vm1547_vm0, %v1499_v63 }
 0x1fa   :  { %1352 = vperm.xlu2 %1747, %v394_v0  }
 0x1fb   :  { %1347 = vperm.xlu1 %1746, %v393_v1   ;;  %1342 = vperm.xlu0 %1745, %v392_v2   ;;  %v190_v2 = vld [vmem:[%s3685_s1 + $0x598] sm:$0xff] }
 0x1fc   :  { %v1188_v6 = vpop.permute.xlu2 %1187 }
 0x1fd   :  { %v1513_v7 = vmul.f32 %v1188_v6, %v169_v3  ;;  %v1138_v8 = vpop.permute.xlu1 %1137  ;;  %v1133_v9 = vpop.permute.xlu0 %1132  ;;  %v180_v3 = vld [vmem:[%s3685_s1 + $0x548] sm:$0xff] }
 0x1fe   :  { %v1503_v10 = vmul.f32 %v1138_v8, %v159_v4  ;;  %v1502_v11 = vmul.f32 %v1133_v9, %v158_v5  ;;  %v179_v4 = vld [vmem:[%s3685_s1 + $0x540] sm:$0xff] }
 0x1ff   :  { %1706 = vst.msk [vmem:[%s3686_s2 + $0x4f0] sm:$0xff] %vm1547_vm0, %v1513_v7 }
 0x200   :  { %1696 = vst.msk [vmem:[%s3686_s2 + $0x4a0] sm:$0xff] %vm1547_vm0, %v1503_v10 }
 0x201   :  { %1695 = vst.msk [vmem:[%s3686_s2 + $0x498] sm:$0xff] %vm1547_vm0, %v1502_v11  ;;  %v193_v11 = vld [vmem:[%s3685_s1 + $0x5b0] sm:$0xff] }
 0x204   :  { %v1203_v15 = vpop.permute.xlu2 %1202 }
 0x205   :  { %v1516_v16 = vmul.f32 %v1203_v15, %v172_v12  ;;  %v1153_v17 = vpop.permute.xlu1 %1152  ;;  %v1148_v18 = vpop.permute.xlu0 %1147  ;;  %v183_v12 = vld [vmem:[%s3685_s1 + $0x560] sm:$0xff] }
 0x206   :  { %v1506_v19 = vmul.f32 %v1153_v17, %v162_v13  ;;  %v1505_v20 = vmul.f32 %v1148_v18, %v161_v14  ;;  %v182_v13 = vld [vmem:[%s3685_s1 + $0x558] sm:$0xff] }
 0x207   :  { %1709 = vst.msk [vmem:[%s3686_s2 + $0x508] sm:$0xff] %vm1547_vm0, %v1516_v16 }
 0x208   :  { %1699 = vst.msk [vmem:[%s3686_s2 + $0x4b8] sm:$0xff] %vm1547_vm0, %v1506_v19 }
 0x209   :  { %1698 = vst.msk [vmem:[%s3686_s2 + $0x4b0] sm:$0xff] %vm1547_vm0, %v1505_v20  ;;  %v196_v20 = vld [vmem:[%s3685_s1 + $0x5c8] sm:$0xff] }
 0x20c   :  { %v1218_v24 = vpop.permute.xlu2 %1217 }
 0x20d   :  { %v1519_v25 = vmul.f32 %v1218_v24, %v175_v21  ;;  %v1168_v26 = vpop.permute.xlu1 %1167  ;;  %v1163_v27 = vpop.permute.xlu0 %1162  ;;  %v186_v21 = vld [vmem:[%s3685_s1 + $0x578] sm:$0xff] }
 0x20e   :  { %v1509_v28 = vmul.f32 %v1168_v26, %v165_v22  ;;  %v1508_v29 = vmul.f32 %v1163_v27, %v164_v23  ;;  %v185_v22 = vld [vmem:[%s3685_s1 + $0x570] sm:$0xff] }
 0x20f   :  { %1712 = vst.msk [vmem:[%s3686_s2 + $0x520] sm:$0xff] %vm1547_vm0, %v1519_v25 }
 0x210   :  { %1702 = vst.msk [vmem:[%s3686_s2 + $0x4d0] sm:$0xff] %vm1547_vm0, %v1509_v28 }
 0x211   :  { %1701 = vst.msk [vmem:[%s3686_s2 + $0x4c8] sm:$0xff] %vm1547_vm0, %v1508_v29  ;;  %v199_v29 = vld [vmem:[%s3685_s1 + $0x5e0] sm:$0xff] }
 0x214   :  { %v1233_v33 = vpop.permute.xlu2 %1232 }
 0x215   :  { %v1522_v34 = vmul.f32 %v1233_v33, %v178_v30  ;;  %v1183_v35 = vpop.permute.xlu1 %1182  ;;  %v1178_v36 = vpop.permute.xlu0 %1177  ;;  %v189_v30 = vld [vmem:[%s3685_s1 + $0x590] sm:$0xff] }
 0x216   :  { %v1512_v37 = vmul.f32 %v1183_v35, %v168_v31  ;;  %v1511_v38 = vmul.f32 %v1178_v36, %v167_v32  ;;  %v188_v31 = vld [vmem:[%s3685_s1 + $0x588] sm:$0xff] }
 0x217   :  { %1715 = vst.msk [vmem:[%s3686_s2 + $0x538] sm:$0xff] %vm1547_vm0, %v1522_v34 }
 0x218   :  { %1705 = vst.msk [vmem:[%s3686_s2 + $0x4e8] sm:$0xff] %vm1547_vm0, %v1512_v37 }
 0x219   :  { %1704 = vst.msk [vmem:[%s3686_s2 + $0x4e0] sm:$0xff] %vm1547_vm0, %v1511_v38  ;;  %v202_v38 = vld [vmem:[%s3685_s1 + $0x5f8] sm:$0xff] }
 0x21c   :  { %v1248_v42 = vpop.permute.xlu2 %1247 }
 0x21d   :  { %v1525_v43 = vmul.f32 %v1248_v42, %v181_v39  ;;  %v1198_v44 = vpop.permute.xlu1 %1197  ;;  %v1193_v45 = vpop.permute.xlu0 %1192  ;;  %v192_v39 = vld [vmem:[%s3685_s1 + $0x5a8] sm:$0xff] }
 0x21e   :  { %v1515_v46 = vmul.f32 %v1198_v44, %v171_v40  ;;  %v1514_v47 = vmul.f32 %v1193_v45, %v170_v41  ;;  %v191_v40 = vld [vmem:[%s3685_s1 + $0x5a0] sm:$0xff] }
 0x21f   :  { %1718 = vst.msk [vmem:[%s3686_s2 + $0x550] sm:$0xff] %vm1547_vm0, %v1525_v43 }
 0x220   :  { %1708 = vst.msk [vmem:[%s3686_s2 + $0x500] sm:$0xff] %vm1547_vm0, %v1515_v46 }
 0x221   :  { %1707 = vst.msk [vmem:[%s3686_s2 + $0x4f8] sm:$0xff] %vm1547_vm0, %v1514_v47  ;;  %v195_v47 = vld [vmem:[%s3685_s1 + $0x5c0] sm:$0xff] }
 0x224   :  { %v1263_v51 = vpop.permute.xlu2 %1262 }
 0x225   :  { %v1528_v52 = vmul.f32 %v1263_v51, %v184_v48  ;;  %v1213_v53 = vpop.permute.xlu1 %1212  ;;  %v1208_v54 = vpop.permute.xlu0 %1207  ;;  %v194_v48 = vld [vmem:[%s3685_s1 + $0x5b8] sm:$0xff] }
 0x226   :  { %v1518_v55 = vmul.f32 %v1213_v53, %v174_v49  ;;  %v1517_v56 = vmul.f32 %v1208_v54, %v173_v50  ;;  %v198_v53 = vld [vmem:[%s3685_s1 + $0x5d8] sm:$0xff]  ;;  %v197_v54 = vld [vmem:[%s3685_s1 + $0x5d0] sm:$0xff] }
 0x227   :  { %1721 = vst.msk [vmem:[%s3686_s2 + $0x568] sm:$0xff] %vm1547_vm0, %v1528_v52 }
 0x228   :  { %1711 = vst.msk [vmem:[%s3686_s2 + $0x518] sm:$0xff] %vm1547_vm0, %v1518_v55 }
 0x229   :  { %1710 = vst.msk [vmem:[%s3686_s2 + $0x510] sm:$0xff] %vm1547_vm0, %v1517_v56 }
 0x22c   :  { %v1278_v60 = vpop.permute.xlu2 %1277 }
 0x22d   :  { %v1531_v61 = vmul.f32 %v1278_v60, %v187_v57  ;;  %v1228_v62 = vpop.permute.xlu1 %1227  ;;  %v1223_v63 = vpop.permute.xlu0 %1222  ;;  %v200_v60 = vld [vmem:[%s3685_s1 + $0x5e8] sm:$0xff] }
 0x22e   :  { %v1521_v0 = vmul.f32 %v1228_v62, %v177_v58  ;;  %v1520_v1 = vmul.f32 %v1223_v63, %v176_v59  ;;  %v201_v59 = vld [vmem:[%s3685_s1 + $0x5f0] sm:$0xff] }
 0x22f   :  { %1724 = vst.msk [vmem:[%s3686_s2 + $0x580] sm:$0xff] %vm1547_vm0, %v1531_v61 }
 0x230   :  { %1714 = vst.msk [vmem:[%s3686_s2 + $0x530] sm:$0xff] %vm1547_vm0, %v1521_v0 }
 0x231   :  { %1713 = vst.msk [vmem:[%s3686_s2 + $0x528] sm:$0xff] %vm1547_vm0, %v1520_v1 }
 0x234   :  { %v1293_v5 = vpop.permute.xlu2 %1292 }
 0x235   :  { %v1534_v6 = vmul.f32 %v1293_v5, %v190_v2  ;;  %v1243_v7 = vpop.permute.xlu1 %1242  ;;  %v1238_v8 = vpop.permute.xlu0 %1237 }
 0x236   :  { %v1524_v9 = vmul.f32 %v1243_v7, %v180_v3  ;;  %v1523_v10 = vmul.f32 %v1238_v8, %v179_v4 }
 0x237   :  { %1727 = vst.msk [vmem:[%s3686_s2 + $0x598] sm:$0xff] %vm1547_vm0, %v1534_v6 }
 0x238   :  { %1717 = vst.msk [vmem:[%s3686_s2 + $0x548] sm:$0xff] %vm1547_vm0, %v1524_v9 }
 0x239   :  { %1716 = vst.msk [vmem:[%s3686_s2 + $0x540] sm:$0xff] %vm1547_vm0, %v1523_v10 }
 0x23c   :  { %v1308_v14 = vpop.permute.xlu2 %1307 }
 0x23d   :  { %v1537_v15 = vmul.f32 %v1308_v14, %v193_v11  ;;  %v1258_v16 = vpop.permute.xlu1 %1257  ;;  %v1253_v17 = vpop.permute.xlu0 %1252 }
 0x23e   :  { %v1527_v18 = vmul.f32 %v1258_v16, %v183_v12  ;;  %v1526_v19 = vmul.f32 %v1253_v17, %v182_v13 }
 0x23f   :  { %1730 = vst.msk [vmem:[%s3686_s2 + $0x5b0] sm:$0xff] %vm1547_vm0, %v1537_v15 }
 0x240   :  { %1720 = vst.msk [vmem:[%s3686_s2 + $0x560] sm:$0xff] %vm1547_vm0, %v1527_v18 }
 0x241   :  { %1719 = vst.msk [vmem:[%s3686_s2 + $0x558] sm:$0xff] %vm1547_vm0, %v1526_v19 }
 0x244   :  { %v1323_v23 = vpop.permute.xlu2 %1322 }
 0x245   :  { %v1540_v24 = vmul.f32 %v1323_v23, %v196_v20  ;;  %v1273_v25 = vpop.permute.xlu1 %1272  ;;  %v1268_v26 = vpop.permute.xlu0 %1267 }
 0x246   :  { %v1530_v27 = vmul.f32 %v1273_v25, %v186_v21  ;;  %v1529_v28 = vmul.f32 %v1268_v26, %v185_v22 }
 0x247   :  { %1733 = vst.msk [vmem:[%s3686_s2 + $0x5c8] sm:$0xff] %vm1547_vm0, %v1540_v24 }
 0x248   :  { %1723 = vst.msk [vmem:[%s3686_s2 + $0x578] sm:$0xff] %vm1547_vm0, %v1530_v27 }
 0x249   :  { %1722 = vst.msk [vmem:[%s3686_s2 + $0x570] sm:$0xff] %vm1547_vm0, %v1529_v28 }
 0x24c   :  { %v1338_v32 = vpop.permute.xlu2 %1337 }
 0x24d   :  { %v1543_v33 = vmul.f32 %v1338_v32, %v199_v29  ;;  %v1288_v34 = vpop.permute.xlu1 %1287  ;;  %v1283_v35 = vpop.permute.xlu0 %1282 }
 0x24e   :  { %v1533_v36 = vmul.f32 %v1288_v34, %v189_v30  ;;  %v1532_v37 = vmul.f32 %v1283_v35, %v188_v31 }
 0x24f   :  { %1736 = vst.msk [vmem:[%s3686_s2 + $0x5e0] sm:$0xff] %vm1547_vm0, %v1543_v33 }
 0x250   :  { %1726 = vst.msk [vmem:[%s3686_s2 + $0x590] sm:$0xff] %vm1547_vm0, %v1533_v36 }
 0x251   :  { %1725 = vst.msk [vmem:[%s3686_s2 + $0x588] sm:$0xff] %vm1547_vm0, %v1532_v37 }
 0x254   :  { %v1353_v41 = vpop.permute.xlu2 %1352 }
 0x255   :  { %v1546_v42 = vmul.f32 %v1353_v41, %v202_v38  ;;  %v1303_v43 = vpop.permute.xlu1 %1302  ;;  %v1298_v44 = vpop.permute.xlu0 %1297 }
 0x256   :  { %v1536_v45 = vmul.f32 %v1303_v43, %v192_v39  ;;  %v1535_v46 = vmul.f32 %v1298_v44, %v191_v40 }
 0x257   :  { %1739 = vst.msk [vmem:[%s3686_s2 + $0x5f8] sm:$0xff] %vm1547_vm0, %v1546_v42 }
 0x258   :  { %1729 = vst.msk [vmem:[%s3686_s2 + $0x5a8] sm:$0xff] %vm1547_vm0, %v1536_v45 }
 0x259   :  { %1728 = vst.msk [vmem:[%s3686_s2 + $0x5a0] sm:$0xff] %vm1547_vm0, %v1535_v46 }
 0x25d   :  { %v1318_v49 = vpop.permute.xlu1 %1317  ;;  %v1313_v50 = vpop.permute.xlu0 %1312 }
 0x25e   :  { %v1539_v51 = vmul.f32 %v1318_v49, %v195_v47  ;;  %v1538_v52 = vmul.f32 %v1313_v50, %v194_v48 }
 0x260   :  { %1732 = vst.msk [vmem:[%s3686_s2 + $0x5c0] sm:$0xff] %vm1547_vm0, %v1539_v51 }
 0x261   :  { %1731 = vst.msk [vmem:[%s3686_s2 + $0x5b8] sm:$0xff] %vm1547_vm0, %v1538_v52 }
 0x265   :  { %v1333_v55 = vpop.permute.xlu1 %1332  ;;  %v1328_v56 = vpop.permute.xlu0 %1327 }
 0x266   :  { %v1542_v57 = vmul.f32 %v1333_v55, %v198_v53  ;;  %v1541_v58 = vmul.f32 %v1328_v56, %v197_v54 }
 0x268   :  { %1735 = vst.msk [vmem:[%s3686_s2 + $0x5d8] sm:$0xff] %vm1547_vm0, %v1542_v57 }
 0x269   :  { %1734 = vst.msk [vmem:[%s3686_s2 + $0x5d0] sm:$0xff] %vm1547_vm0, %v1541_v58 }
 0x26d   :  { %v1348_v61 = vpop.permute.xlu1 %1347  ;;  %v1343_v62 = vpop.permute.xlu0 %1342 }
 0x26e   :  { %v1545_v63 = vmul.f32 %v1348_v61, %v201_v59  ;;  %v1544_v0 = vmul.f32 %v1343_v62, %v200_v60 }
 0x270   :  { %1738 = vst.msk [vmem:[%s3686_s2 + $0x5f0] sm:$0xff] %vm1547_vm0, %v1545_v63 }
 0x271   :  { %1737 = vst.msk [vmem:[%s3686_s2 + $0x5e8] sm:$0xff] %vm1547_vm0, %v1544_v0 }

</bundles_post_ra>
